<compile_context>
chip_gen: v6e
topology: v6e:2x2x1
jax: 0.10.0
libtpu: 0.0.40
codegen_flags: <defaults>
</compile_context>

<pallas_src>
import functools
import math

import jax
import jax.numpy as jnp
from jax import lax
from jax.experimental import pallas as pl
from jax.experimental.pallas import tpu as pltpu


def _round_up(v, m):
    return -(-v // m) * m


def _tap_group(cin, n_taps):
    """Number of conv taps packed per patch store.

    Grouped only when g*Cin == 128 (store starts 128-lane aligned and is one
    full register row wide -> unmasked vst), e.g. Cin=64 -> 2, Cin=32 -> 4.
    Otherwise 1 (per-tap stores, possibly masked -- only hit by tiny Cin or
    the 67-channel input conv, both negligible next to the 64-channel stack).
    """
    if cin % 128 == 0:
        return 1
    g = 128 // math.gcd(cin, 128)
    if g * cin == 128 and 1 < g <= min(4, n_taps):
        return g
    return 1


def _pick_tile_h(hout, wout, k_pad, requested, itemsize):
    """Row-block size: aim for >= ~512 matmul rows while keeping the im2col
    scratch under ~4 MiB (v7x has 64 MiB VMEM/TC)."""
    if requested is None:
        lo = -(-512 // max(wout, 1))
        hi = max(1, (4 * 2 ** 20) // max(wout * k_pad * itemsize, 1))
        requested = min(hi, max(lo, min(hi, 64)))
    return max(1, min(int(requested), hout))


def _conv_block_kernel(x_ref, w_ref, b_ref, o_ref, patch_ref, *,
                       kw_sz, n_taps, group, use_act, neg_slope, hb_axis):
    # x_ref     : (1, Hp, Wp, Cin)          padded NHWC frame (resident)
    # w_ref     : (k_pad, Cout)             fused im2col weight slab (resident)
    # b_ref     : (1, Cout)                 bias, f32 (resident)
    # o_ref     : (1, rows, Wout, Cout)     NHWC output row block
    # patch_ref : (rows, Wout, k_pad)       VMEM scratch: im2col patch
    tile_h = o_ref.shape[1]
    out_w = o_ref.shape[2]
    cout = o_ref.shape[3]
    cin = x_ref.shape[3]
    k_pad = patch_ref.shape[2]

    hb = pl.program_id(hb_axis)
    row0 = pl.multiple_of(hb * tile_h, tile_h)

    # Build the im2col patch directly from ref slices (no big live register
    # value -> no spill).  Tap t = kh*KW + kw lands at channel offset t*Cin,
    # matching the weight-slab row order.  `group` taps share one store so the
    # store is 128-lane aligned and unmasked for Cin in {32, 64, 128, ...}.
    n_groups = -(-n_taps // group)
    for grp in range(n_groups):
        parts = []
        for j in range(group):
            t = grp * group + j
            if t < n_taps:
                kh, kw = divmod(t, kw_sz)
                parts.append(
                    x_ref[0, pl.ds(row0 + kh, tile_h), pl.ds(kw, out_w), :])
            else:
                # Padded tap slot: zero-fill so stale VMEM (possibly NaN bit
                # patterns) never reaches the matmul (its weight rows are 0).
                parts.append(jnp.zeros((tile_h, out_w, cin), patch_ref.dtype))
        val = parts[0] if len(parts) == 1 else jnp.concatenate(parts, axis=-1)
        off = grp * group * cin
        patch_ref[:, :, off:off + group * cin] = val

    # Single MXU matmul, K = k_pad (>= KH*KW*Cin), f32 accumulation.
    patch = patch_ref[...].reshape(tile_h * out_w, k_pad)
    y = jnp.dot(patch, w_ref[...], preferred_element_type=jnp.float32)
    y = y + b_ref[...]                       # f32 bias (v5e: no bf16 VPU)
    if use_act:
        if 0.0 <= neg_slope <= 1.0:
            y = jnp.maximum(y, neg_slope * y)        # LeakyReLU, single select
        else:
            y = jnp.where(y > 0, y, neg_slope * y)

    o_ref[0] = y.reshape(tile_h, out_w, cout).astype(o_ref.dtype)


def conv_block_nhwc(x_nhwc, weight_oihw, bias, *, use_act=True,
                    negative_slope=0.2, padding=1, tile_h=None,
                    compute_dtype=jnp.bfloat16, out_dtype=None):
    """ConvBlock forward, channels-last.  (N, H, W, Cin) -> (N, H', W', Cout).

    Chained ConvBlocks should call this directly (keep NHWC end-to-end) and
    pass out_dtype=jnp.bfloat16 so inter-layer activations stay bf16."""
    N, H, W, Cin = x_nhwc.shape
    Cout, Cin_w, KH, KW = weight_oihw.shape
    assert Cin_w == Cin, (Cin_w, Cin)
    out_dtype = x_nhwc.dtype if out_dtype is None else jnp.dtype(out_dtype)

    Hout = H + 2 * padding - (KH - 1)
    Wout = W + 2 * padding - (KW - 1)
    n_taps = KH * KW
    group = _tap_group(Cin, n_taps)
    n_groups = -(-n_taps // group)
    k_pad = n_groups * group * Cin           # >= KH*KW*Cin, 128-aligned if grouped

    csize = jnp.dtype(compute_dtype).itemsize
    rows = _pick_tile_h(Hout, Wout, k_pad, tile_h, csize)
    num_h_blocks = -(-Hout // rows)          # ragged last block is masked

    # Conv zero-padding + extra bottom rows so the (possibly ragged) last row
    # block's halo read stays inside the VMEM-resident frame.
    extra_bottom = max(0, num_h_blocks * rows + (KH - 1) - (H + 2 * padding))
    x_pad = jnp.pad(x_nhwc.astype(compute_dtype),
                    ((0, 0), (padding, padding + extra_bottom),
                     (padding, padding), (0, 0)))
    Hp = H + 2 * padding + extra_bottom
    Wp = W + 2 * padding

    # OIHW -> (KH*KW*Cin, Cout) im2col slab (kh-major, kw, ci), zero rows for
    # the padded tap slots.
    w2d = jnp.transpose(weight_oihw, (2, 3, 1, 0)).reshape(n_taps * Cin, Cout)
    if k_pad > n_taps * Cin:
        w2d = jnp.pad(w2d, ((0, k_pad - n_taps * Cin), (0, 0)))
    w2d = w2d.astype(compute_dtype)
    b2d = bias.reshape(1, Cout).astype(jnp.float32)

    # VMEM estimate: double-buffering counted once (inputs whose block index
    # never changes still get two buffers from the pipeline), plus the patch
    # scratch and a fixed compiler-scratch margin.  Capped at 48 MiB (v7x
    # headroom); large frames should use the halo-DMA variant (TODO above).
    sub_c = 8 * (4 // csize)
    osz = jnp.dtype(out_dtype).itemsize
    sub_o = 8 * max(1, 4 // osz)
    in_bytes = Hp * _round_up(Wp, sub_c) * _round_up(Cin, 128) * csize
    w_bytes = _round_up(k_pad, sub_c) * _round_up(Cout, 128) * csize
    b_bytes = 8 * 128 * 4
    out_bytes = rows * _round_up(Wout, sub_o) * _round_up(Cout, 128) * osz
    patch_bytes = rows * _round_up(Wout, sub_c) * _round_up(k_pad, 128) * csize
    est = 2 * (in_bytes + w_bytes + b_bytes + out_bytes) + patch_bytes + (2 << 20)
    vmem_limit = int(min(max(est, 16 * 2 ** 20), 48 * 2 ** 20))

    # Grid ordering: BasicVSR's recurrent propagation runs with N == 1, so put
    # the row-block axis first there (megacore splits the leading axis -> both
    # v7x TensorCores get work).  For N > 1 keep batch leading so the resident
    # frame is DMA'd once per batch element, not once per grid step.
    if N == 1:
        grid = (num_h_blocks, N)
        hb_axis = 0
        x_map = lambda hb, n: (n, 0, 0, 0)
        o_map = lambda hb, n: (n, hb, 0, 0)
    else:
        grid = (N, num_h_blocks)
        hb_axis = 1
        x_map = lambda n, hb: (n, 0, 0, 0)
        o_map = lambda n, hb: (n, hb, 0, 0)
    const_map = lambda a, b: (0, 0)

    kernel = functools.partial(_conv_block_kernel, kw_sz=KW, n_taps=n_taps,
                               group=group, use_act=use_act,
                               neg_slope=negative_slope, hb_axis=hb_axis)

    out = pl.pallas_call(
        kernel,
        out_shape=jax.ShapeDtypeStruct((N, Hout, Wout, Cout), out_dtype),
        grid_spec=pltpu.PrefetchScalarGridSpec(
            num_scalar_prefetch=0,
            grid=grid,
            in_specs=[
                # whole padded frame: constant block index across the h-block
                # axis keeps it resident (one DMA per batch element).
                pl.BlockSpec((1, Hp, Wp, Cin), x_map),
                # fused weight slab + bias: resident across the whole grid.
                pl.BlockSpec((k_pad, Cout), const_map),
                pl.BlockSpec((1, Cout), const_map),
            ],
            out_specs=pl.BlockSpec((1, rows, Wout, Cout), o_map),
            scratch_shapes=[pltpu.VMEM((rows, Wout, k_pad), compute_dtype)],
        ),
        compiler_params=pltpu.CompilerParams(
            dimension_semantics=("parallel", "parallel"),
            vmem_limit_bytes=vmem_limit),
    )(x_pad, w2d, b2d)

    return out


def conv_block_pallas(x_nchw, weight_oihw, bias, *, use_act=True,
                      negative_slope=0.2, padding=1, tile_h=None,
                      out_dtype=None):
    """PyTorch-layout (NCHW) parity wrapper.  For stacks of ConvBlocks use
    conv_block_nhwc directly and keep features NHWC (and bf16) end-to-end."""
    x_nhwc = jnp.transpose(x_nchw, (0, 2, 3, 1))
    out_nhwc = conv_block_nhwc(x_nhwc, weight_oihw, bias, use_act=use_act,
                               negative_slope=negative_slope, padding=padding,
                               tile_h=tile_h, out_dtype=out_dtype)
    return jnp.transpose(out_nhwc, (0, 3, 1, 2))


def _reference(x_nchw, weight_oihw, bias, *, use_act=True,
               negative_slope=0.2, padding=1):
    y = lax.conv_general_dilated(
        x_nchw, weight_oihw, window_strides=(1, 1),
        padding=[(padding, padding), (padding, padding)],
        dimension_numbers=("NCHW", "OIHW", "NCHW"),
        precision=lax.Precision.HIGHEST)
    y = y + bias.reshape(1, -1, 1, 1)
    if use_act:
        y = jnp.where(y > 0, y, negative_slope * y)
    return y


def _round_bf16(a):
    return a.astype(jnp.bfloat16).astype(jnp.float32)


if __name__ == "__main__":
    key = jax.random.PRNGKey(0)
    kx, kw1, kb1, kw2, kb2, kx64, kw64, kb64 = jax.random.split(key, 8)

    N, Cin, H, W = 2, 4, 16, 16
    Cmid, KH, KW = 8, 3, 3

    x = jax.random.normal(kx, (N, Cin, H, W), jnp.float32)
    w1 = jax.random.normal(kw1, (Cmid, Cin, KH, KW), jnp.float32) * 0.1
    b1 = jax.random.normal(kb1, (Cmid,), jnp.float32) * 0.1
    w2 = jax.random.normal(kw2, (Cmid, Cmid, KH, KW), jnp.float32) * 0.1
    b2 = jax.random.normal(kb2, (Cmid,), jnp.float32) * 0.1

    ref1 = _reference(_round_bf16(x), _round_bf16(w1), b1,
                      use_act=True, negative_slope=0.2, padding=1)

    # --- 1) single ConvBlock, PyTorch NCHW parity path (exact row blocks) ----
    out1 = conv_block_pallas(x, w1, b1, use_act=True, negative_slope=0.2,
                             padding=1, tile_h=8)
    out1 = jax.block_until_ready(out1)
    assert out1.shape == (N, Cmid, H, W)
    assert jnp.allclose(out1, ref1, atol=2e-2, rtol=2e-2)

    # --- 2) ragged row blocks (tile_h=5 does not divide H=16) ----------------
    out1r = conv_block_pallas(x, w1, b1, use_act=True, negative_slope=0.2,
                              padding=1, tile_h=5)
    out1r = jax.block_until_ready(out1r)
    assert jnp.allclose(out1r, ref1, atol=2e-2, rtol=2e-2)

    # --- 3) two chained ConvBlocks kept NHWC + bf16 between layers -----------
    x_nhwc = jnp.transpose(x, (0, 2, 3, 1))
    h1 = conv_block_nhwc(x_nhwc, w1, b1, use_act=True, negative_slope=0.2,
                         padding=1, tile_h=8, out_dtype=jnp.bfloat16)
    h2 = conv_block_nhwc(h1, w2, b2, use_act=True, negative_slope=0.2,
                         padding=1, tile_h=8, out_dtype=jnp.float32)
    h2 = jax.block_until_ready(h2)
    assert h2.shape == (N, H, W, Cmid)
    ref2 = _reference(_round_bf16(ref1), _round_bf16(w2), b2,
                      use_act=True, negative_slope=0.2, padding=1)
    assert jnp.allclose(jnp.transpose(h2, (0, 3, 1, 2)), ref2,
                        atol=5e-2, rtol=5e-2)

    # --- 4) mid_channels=64 block (N=1): paired-tap lane-aligned patch path --
    Cm = 64
    x64 = jax.random.normal(kx64, (1, Cm, H, W), jnp.float32)
    w64 = jax.random.normal(kw64, (Cm, Cm, KH, KW), jnp.float32) * 0.05
    b64 = jax.random.normal(kb64, (Cm,), jnp.float32) * 0.1
    out64 = conv_block_pallas(x64, w64, b64, use_act=True, negative_slope=0.1,
                              padding=1, tile_h=8)
    out64 = jax.block_until_ready(out64)
    ref64 = _reference(_round_bf16(x64), _round_bf16(w64), b64,
                       use_act=True, negative_slope=0.1, padding=1)
    assert jnp.allclose(out64, ref64, atol=3e-2, rtol=3e-2)

    print("KERNEL_OK")
</pallas_src>

<mosaic_0001>
module attributes {stable_mosaic.version = 11 : i64} {
  func.func @_conv_block_kernel(%arg0: i32, %arg1: i32, %arg2: memref<1x18x18x4xbf16, #tpu.memory_space<vmem>>, %arg3: memref<36x8xbf16, #tpu.memory_space<vmem>>, %arg4: memref<1x8xf32, #tpu.memory_space<vmem>>, %arg5: memref<1x8x16x8xf32, #tpu.memory_space<vmem>>, %arg6: memref<8x16x36xbf16, #tpu.memory_space<vmem>>) attributes {dimension_semantics = [#tpu.dimension_semantics<parallel>, #tpu.dimension_semantics<parallel>], iteration_bounds = array<i64: 2, 2>, scalar_prefetch = 0 : i64, scratch_operands = 1 : i64, tpu.core_type = #tpu.core_type<tc>, window_params = [{transform_indices = @transform_0, window_bounds = array<i64: 1, 18, 18, 4>}, {pipeline_mode = #tpu.pipeline_mode<synchronous>, transform_indices = @transform_1, window_bounds = array<i64: 36, 8>}, {pipeline_mode = #tpu.pipeline_mode<synchronous>, transform_indices = @transform_2, window_bounds = array<i64: 1, 8>}, {transform_indices = @transform_3, window_bounds = array<i64: 1, 8, 16, 8>}]} {
    %c8_i32 = arith.constant 8 : i32
    %0 = arith.muli %arg1, %c8_i32 : i32
    %1 = tpu.assume_multiple %0, 8 : i32
    %c0_i32 = arith.constant 0 : i32
    %2 = arith.addi %1, %c0_i32 : i32
    %c0 = arith.constant 0 : index
    %3 = arith.index_cast %2 : i32 to index
    %c0_0 = arith.constant 0 : index
    %c0_1 = arith.constant 0 : index
    %4 = vector.load %arg2[%c0, %3, %c0_0, %c0_1] : memref<1x18x18x4xbf16, #tpu.memory_space<vmem>>, vector<1x8x16x4xbf16>
    %5 = vector.shape_cast %4 : vector<1x8x16x4xbf16> to vector<8x16x4xbf16>
    %c0_2 = arith.constant 0 : index
    %c0_3 = arith.constant 0 : index
    %c0_4 = arith.constant 0 : index
    %6 = vector.load %arg6[%c0_2, %c0_3, %c0_4] : memref<8x16x36xbf16, #tpu.memory_space<vmem>>, vector<8x16x4xbf16>
    tpu.vector_store %arg6[%c0_2, %c0_3, %c0_4], %5 {strides = array<i32>} : memref<8x16x36xbf16, #tpu.memory_space<vmem>>, vector<8x16x4xbf16>,
    %c0_i32_5 = arith.constant 0 : i32
    %7 = arith.addi %1, %c0_i32_5 : i32
    %c0_6 = arith.constant 0 : index
    %8 = arith.index_cast %7 : i32 to index
    %c1 = arith.constant 1 : index
    %c0_7 = arith.constant 0 : index
    %9 = vector.load %arg2[%c0_6, %8, %c1, %c0_7] : memref<1x18x18x4xbf16, #tpu.memory_space<vmem>>, vector<1x8x16x4xbf16>
    %10 = vector.shape_cast %9 : vector<1x8x16x4xbf16> to vector<8x16x4xbf16>
    %c0_8 = arith.constant 0 : index
    %c0_9 = arith.constant 0 : index
    %c4 = arith.constant 4 : index
    %11 = vector.load %arg6[%c0_8, %c0_9, %c4] : memref<8x16x36xbf16, #tpu.memory_space<vmem>>, vector<8x16x4xbf16>
    tpu.vector_store %arg6[%c0_8, %c0_9, %c4], %10 {strides = array<i32>} : memref<8x16x36xbf16, #tpu.memory_space<vmem>>, vector<8x16x4xbf16>,
    %c0_i32_10 = arith.constant 0 : i32
    %12 = arith.addi %1, %c0_i32_10 : i32
    %c0_11 = arith.constant 0 : index
    %13 = arith.index_cast %12 : i32 to index
    %c2 = arith.constant 2 : index
    %c0_12 = arith.constant 0 : index
    %14 = vector.load %arg2[%c0_11, %13, %c2, %c0_12] : memref<1x18x18x4xbf16, #tpu.memory_space<vmem>>, vector<1x8x16x4xbf16>
    %15 = vector.shape_cast %14 : vector<1x8x16x4xbf16> to vector<8x16x4xbf16>
    %c0_13 = arith.constant 0 : index
    %c0_14 = arith.constant 0 : index
    %c8 = arith.constant 8 : index
    %16 = vector.load %arg6[%c0_13, %c0_14, %c8] : memref<8x16x36xbf16, #tpu.memory_space<vmem>>, vector<8x16x4xbf16>
    tpu.vector_store %arg6[%c0_13, %c0_14, %c8], %15 {strides = array<i32>} : memref<8x16x36xbf16, #tpu.memory_space<vmem>>, vector<8x16x4xbf16>,
    %c1_i32 = arith.constant 1 : i32
    %17 = arith.addi %1, %c1_i32 : i32
    %c0_15 = arith.constant 0 : index
    %18 = arith.index_cast %17 : i32 to index
    %c0_16 = arith.constant 0 : index
    %c0_17 = arith.constant 0 : index
    %19 = vector.load %arg2[%c0_15, %18, %c0_16, %c0_17] : memref<1x18x18x4xbf16, #tpu.memory_space<vmem>>, vector<1x8x16x4xbf16>
    %20 = vector.shape_cast %19 : vector<1x8x16x4xbf16> to vector<8x16x4xbf16>
    %c0_18 = arith.constant 0 : index
    %c0_19 = arith.constant 0 : index
    %c12 = arith.constant 12 : index
    %21 = vector.load %arg6[%c0_18, %c0_19, %c12] : memref<8x16x36xbf16, #tpu.memory_space<vmem>>, vector<8x16x4xbf16>
    tpu.vector_store %arg6[%c0_18, %c0_19, %c12], %20 {strides = array<i32>} : memref<8x16x36xbf16, #tpu.memory_space<vmem>>, vector<8x16x4xbf16>,
    %c1_i32_20 = arith.constant 1 : i32
    %22 = arith.addi %1, %c1_i32_20 : i32
    %c0_21 = arith.constant 0 : index
    %23 = arith.index_cast %22 : i32 to index
    %c1_22 = arith.constant 1 : index
    %c0_23 = arith.constant 0 : index
    %24 = vector.load %arg2[%c0_21, %23, %c1_22, %c0_23] : memref<1x18x18x4xbf16, #tpu.memory_space<vmem>>, vector<1x8x16x4xbf16>
    %25 = vector.shape_cast %24 : vector<1x8x16x4xbf16> to vector<8x16x4xbf16>
    %c0_24 = arith.constant 0 : index
    %c0_25 = arith.constant 0 : index
    %c16 = arith.constant 16 : index
    %26 = vector.load %arg6[%c0_24, %c0_25, %c16] : memref<8x16x36xbf16, #tpu.memory_space<vmem>>, vector<8x16x4xbf16>
    tpu.vector_store %arg6[%c0_24, %c0_25, %c16], %25 {strides = array<i32>} : memref<8x16x36xbf16, #tpu.memory_space<vmem>>, vector<8x16x4xbf16>,
    %c1_i32_26 = arith.constant 1 : i32
    %27 = arith.addi %1, %c1_i32_26 : i32
    %c0_27 = arith.constant 0 : index
    %28 = arith.index_cast %27 : i32 to index
    %c2_28 = arith.constant 2 : index
    %c0_29 = arith.constant 0 : index
    %29 = vector.load %arg2[%c0_27, %28, %c2_28, %c0_29] : memref<1x18x18x4xbf16, #tpu.memory_space<vmem>>, vector<1x8x16x4xbf16>
    %30 = vector.shape_cast %29 : vector<1x8x16x4xbf16> to vector<8x16x4xbf16>
    %c0_30 = arith.constant 0 : index
    %c0_31 = arith.constant 0 : index
    %c20 = arith.constant 20 : index
    %31 = vector.load %arg6[%c0_30, %c0_31, %c20] : memref<8x16x36xbf16, #tpu.memory_space<vmem>>, vector<8x16x4xbf16>
    tpu.vector_store %arg6[%c0_30, %c0_31, %c20], %30 {strides = array<i32>} : memref<8x16x36xbf16, #tpu.memory_space<vmem>>, vector<8x16x4xbf16>,
    %c2_i32 = arith.constant 2 : i32
    %32 = arith.addi %1, %c2_i32 : i32
    %c0_32 = arith.constant 0 : index
    %33 = arith.index_cast %32 : i32 to index
    %c0_33 = arith.constant 0 : index
    %c0_34 = arith.constant 0 : index
    %34 = vector.load %arg2[%c0_32, %33, %c0_33, %c0_34] : memref<1x18x18x4xbf16, #tpu.memory_space<vmem>>, vector<1x8x16x4xbf16>
    %35 = vector.shape_cast %34 : vector<1x8x16x4xbf16> to vector<8x16x4xbf16>
    %c0_35 = arith.constant 0 : index
    %c0_36 = arith.constant 0 : index
    %c24 = arith.constant 24 : index
    %36 = vector.load %arg6[%c0_35, %c0_36, %c24] : memref<8x16x36xbf16, #tpu.memory_space<vmem>>, vector<8x16x4xbf16>
    tpu.vector_store %arg6[%c0_35, %c0_36, %c24], %35 {strides = array<i32>} : memref<8x16x36xbf16, #tpu.memory_space<vmem>>, vector<8x16x4xbf16>,
    %c2_i32_37 = arith.constant 2 : i32
    %37 = arith.addi %1, %c2_i32_37 : i32
    %c0_38 = arith.constant 0 : index
    %38 = arith.index_cast %37 : i32 to index
    %c1_39 = arith.constant 1 : index
    %c0_40 = arith.constant 0 : index
    %39 = vector.load %arg2[%c0_38, %38, %c1_39, %c0_40] : memref<1x18x18x4xbf16, #tpu.memory_space<vmem>>, vector<1x8x16x4xbf16>
    %40 = vector.shape_cast %39 : vector<1x8x16x4xbf16> to vector<8x16x4xbf16>
    %c0_41 = arith.constant 0 : index
    %c0_42 = arith.constant 0 : index
    %c28 = arith.constant 28 : index
    %41 = vector.load %arg6[%c0_41, %c0_42, %c28] : memref<8x16x36xbf16, #tpu.memory_space<vmem>>, vector<8x16x4xbf16>
    tpu.vector_store %arg6[%c0_41, %c0_42, %c28], %40 {strides = array<i32>} : memref<8x16x36xbf16, #tpu.memory_space<vmem>>, vector<8x16x4xbf16>,
    %c2_i32_43 = arith.constant 2 : i32
    %42 = arith.addi %1, %c2_i32_43 : i32
    %c0_44 = arith.constant 0 : index
    %43 = arith.index_cast %42 : i32 to index
    %c2_45 = arith.constant 2 : index
    %c0_46 = arith.constant 0 : index
    %44 = vector.load %arg2[%c0_44, %43, %c2_45, %c0_46] : memref<1x18x18x4xbf16, #tpu.memory_space<vmem>>, vector<1x8x16x4xbf16>
    %45 = vector.shape_cast %44 : vector<1x8x16x4xbf16> to vector<8x16x4xbf16>
    %c0_47 = arith.constant 0 : index
    %c0_48 = arith.constant 0 : index
    %c32 = arith.constant 32 : index
    %46 = vector.load %arg6[%c0_47, %c0_48, %c32] : memref<8x16x36xbf16, #tpu.memory_space<vmem>>, vector<8x16x4xbf16>
    tpu.vector_store %arg6[%c0_47, %c0_48, %c32], %45 {strides = array<i32>} : memref<8x16x36xbf16, #tpu.memory_space<vmem>>, vector<8x16x4xbf16>,
    %c0_49 = arith.constant 0 : index
    %c0_50 = arith.constant 0 : index
    %c0_51 = arith.constant 0 : index
    %47 = vector.load %arg6[%c0_49, %c0_50, %c0_51] : memref<8x16x36xbf16, #tpu.memory_space<vmem>>, vector<8x16x36xbf16>
    %48 = vector.shape_cast %47 : vector<8x16x36xbf16> to vector<128x36xbf16>
    %c0_52 = arith.constant 0 : index
    %c0_53 = arith.constant 0 : index
    %49 = vector.load %arg3[%c0_52, %c0_53] : memref<36x8xbf16, #tpu.memory_space<vmem>>, vector<36x8xbf16>
    %cst = arith.constant dense<0.000000e+00> : vector<128x8xf32>
    %50 = tpu.matmul %48, %49, %cst {dimension_numbers = #tpu.dot_dimension_numbers<[1], [0], [0], [1], [0, 0, 1, 1], [], []>} : vector<128x36xbf16>, vector<36x8xbf16>, vector<128x8xf32> -> vector<128x8xf32>
    %c0_54 = arith.constant 0 : index
    %c0_55 = arith.constant 0 : index
    %51 = vector.load %arg4[%c0_54, %c0_55] : memref<1x8xf32, #tpu.memory_space<vmem>>, vector<1x8xf32>
    %52 = vector.broadcast %51 : vector<1x8xf32> to vector<128x8xf32>
    %53 = arith.addf %50, %52 : vector<128x8xf32>
    %cst_56 = arith.constant 2.000000e-01 : f32
    %54 = vector.broadcast %cst_56 : f32 to vector<128x8xf32>
    %55 = arith.mulf %54, %53 : vector<128x8xf32>
    %56 = arith.maximumf %53, %55 : vector<128x8xf32>
    %57 = vector.shape_cast %56 : vector<128x8xf32> to vector<8x16x8xf32>
    %c0_57 = arith.constant 0 : index
    %c0_58 = arith.constant 0 : index
    %c0_59 = arith.constant 0 : index
    %c0_60 = arith.constant 0 : index
    %58 = vector.load %arg5[%c0_57, %c0_58, %c0_59, %c0_60] : memref<1x8x16x8xf32, #tpu.memory_space<vmem>>, vector<1x8x16x8xf32>
    %59 = vector.shape_cast %58 : vector<1x8x16x8xf32> to vector<8x16x8xf32>
    %60 = vector.shape_cast %57 : vector<8x16x8xf32> to vector<1x8x16x8xf32>
    tpu.vector_store %arg5[%c0_57, %c0_58, %c0_59, %c0_60], %60 {strides = array<i32>} : memref<1x8x16x8xf32, #tpu.memory_space<vmem>>, vector<1x8x16x8xf32>,
    return
  }
  func.func @transform_0(%arg0: i32, %arg1: i32) -> (i32, i32, i32, i32) {
    %c0_i32 = arith.constant 0 : i32
    %c0_i32_0 = arith.constant 0 : i32
    %c0_i32_1 = arith.constant 0 : i32
    %c0_i32_2 = arith.constant 0 : i32
    return %arg0, %c0_i32, %c0_i32_0, %c0_i32_1 : i32, i32, i32, i32
  }
  func.func @transform_1(%arg0: i32, %arg1: i32) -> (i32, i32) {
    %c0_i32 = arith.constant 0 : i32
    %c0_i32_0 = arith.constant 0 : i32
    %c0_i32_1 = arith.constant 0 : i32
    return %c0_i32, %c0_i32_0 : i32, i32
  }
  func.func @transform_2(%arg0: i32, %arg1: i32) -> (i32, i32) {
    %c0_i32 = arith.constant 0 : i32
    %c0_i32_0 = arith.constant 0 : i32
    %c0_i32_1 = arith.constant 0 : i32
    return %c0_i32, %c0_i32_0 : i32, i32
  }
  func.func @transform_3(%arg0: i32, %arg1: i32) -> (i32, i32, i32, i32) {
    %c0_i32 = arith.constant 0 : i32
    %c0_i32_0 = arith.constant 0 : i32
    %c0_i32_1 = arith.constant 0 : i32
    return %arg0, %arg1, %c0_i32, %c0_i32_0 : i32, i32, i32, i32
  }
}

</mosaic_0001>

<bundles_post_ra>
// kernel: tpu_custom_call.1
= control target key start
LH: loop header
LB: loop body
LE: loop exit
PB: predicated region body
PF: predicated region fallthrough
CT: control target
= control target key end

     0   :  { %s2511_s12 = smov 0   ;;  %s2513_s13 = smov 0   ;;  %s3402_s0 = inlined_call_operand.vmem [shape: bf16[2,18,18,4], index: 0, kind: input, shape index: {}]   ;;  %s3403_s1 = inlined_call_operand.vmem [shape: bf16[36,8], index: 1, kind: input, shape index: {}]   ;;  %s3404_s2 = inlined_call_operand.vmem [shape: f32[1,8], index: 2, kind: input, shape index: {}]   ;;  %s3405_s3 = inlined_call_operand.vmem [shape: f32[2,16,16,8], index: 3, kind: output, shape index: {}]  }
   0x1   :  { %s2515_s14 = smov 0   ;;  %s2517_s15 = smov 0  }
   0x2   :  { %s2519_s16 = smov 0  }
   0x3 LB: > { %s22_s17 = sadd.s32 1, %s2473_s14  ;;  %s25_s18 = sadd.s32 1, %s2477_s15  ;;  %s2481_s16 = sphi %s2519_s16, %s13_s16   ;;  %s2477_s15 = sphi %s2517_s15, %s3413_s15   ;;  %s2473_s14 = sphi %s2515_s14, %s3412_s14   ;;  %s2469_s13 = sphi %s2513_s13, %s3411_s13   ;;  %s2465_s12 = sphi %s2511_s12, %s3410_s12  }
   0x4   : > { %p23_p0 = scmp.ge.s32.totalorder %s22_s17, 2  ;;  %p2154_p1 = scmp.ge.s32.totalorder %s2481_s16, 1 }
   0x5   : > { %p151_p2 = scmp.lt.s32.totalorder %s2481_s16, 5 }
   0x6   : > { %s3415_s17 = smov (%p23_p0, %s22_s17), 0  ;;  %s3417_s18 = smov (!%p23_p0, %s25_s18), %s2477_s15 }
   0x7   : > { %p152_p3 = pnand %p2154_p1, %p151_p2  ;;  %p27_p4 = scmp.ge.s32.totalorder %s3417_s18, 2 }
   0x8   : > { %p180_p5 = scmp.lt.s32.totalorder (!%p152_p3), %s2469_s13, 1  ;;  %s2341_s19 = smul.u32 (!%p152_p3), 96, %s2465_s12 }
   0x9   : > { %s3419_s18 = smov (%p27_p4, %s3417_s18), 0  ;;  %155 = sbr.rel (%p152_p3) target bundleno = 609 (0x261), region = 32 }
   0xa   : > { %s2483_s25 = smov (!%p152_p3), 8   ;;  %s2484_s26 = smov (!%p152_p3), 4  }
   0xb   : > { %s2485_s27 = smov (!%p152_p3), 12   ;;  %s2486_s28 = smov (!%p152_p3), 16  }
   0xc   : > { %s2487_s29 = smov (!%p152_p3), 20   ;;  %s2488_s30 = smov (!%p152_p3), 24  }
   0xd   : > { %s2489_s4 = smov (!%p152_p3), 28   ;;  %s2490_s5 = smov (!%p152_p3), 32  }
   0xe   : > { %s3421_s13 = smov (!%p180_p5, %s2469_s13), 1  ;;  %vm566_vm0 = vcmask 1042432   ;;  %vm567_vm1 = vcmask 1046532   ;;  %vm258_vm3 = vsmask.f32 3328  ;;  %vm217_vm6 = vcmask 27648  }
   0xf   : > { %s2383_s20 = smul.u32 216, %s3421_s13  ;;  %vm2552_vm2 = vmor %vm566_vm0, %vm567_vm1  ;;  %vm259_vm4 = vsmask.f32 7440  ;;  %vm501_vm7 = vcmask 60448   ;;  %vm673_vm8 = vcmask 93248   ;;  %vm1900_vm9 = vcmask 1041408  }
  0x10   : > { %vm2574_vm5 = vmor %vm258_vm3, %vm259_vm4  ;;  %vm774_vm10 = vcmask 126048   ;;  %vm1055_vm11 = vcmask 158848   ;;  %vm1224_vm12 = vcmask 191648   ;;  %vm1325_vm13 = vcmask 224448   ;;  %s2158_s21 = sshll.u32 %s3421_s13, 5 }
  0x11   : > { %s184_s23 = scalar_lea.vmem %s3402_s0, %s2383_s20  ;;  %vm1606_vm14 = vcmask 257248   ;;  %vm1775_vm15 = vcmask 290048   ;;  %vm1875_vm0 = vcmask 293888   ;;  %vm2033_vm1 = vcmask 64512  }
  0x12   : > { %s2550_s24 = scalar_lea.vmem %s184_s23, %s2341_s19  ;;  %s2156_s19 = sshll.u32 %s2465_s12, 3 }
  0x13   : > { %v519_v1 = vld [vmem:[%s2550_s24 + $0x4] sm:$0xf]  ;;  %v520_v2 = vld [vmem:[%s2550_s24 + $0x8] sm:$0x1]  ;;  %v518_v3 = vld [vmem:[%s2550_s24] sm:$0xe] }
  0x14   : > { %v571_v4 = vrot.slane %v519_v1, 5  ;;  %v574_v5 = vrot.slane %v520_v2, 5  ;;  %v2163_v6 = vrot.slane %v518_v3, 9  ;;  %v246_v7 = vld [vmem:[%s2550_s24 + $0x30] sm:$0xf]  ;;  %p188_p6 = scmp.lt.s32.totalorder %s2156_s19, 15 }
  0x15   : > { %v247_v8 = vld [vmem:[%s2550_s24 + $0x34] sm:$0xf]  ;;  %v358_v9 = vshrl.u32 %v246_v7, 16  ;;  %v361_v10 = vshll.u32 %v246_v7, 16  ;;  %v234_v11 = vld [vmem:[%s2550_s24] sm:$0xf] }
  0x16   : > { %v573_v12 = vrot.slane %v571_v4, 4  ;;  %v572_v13 = vsel %vm2552_vm2, %v2163_v6, %v571_v4  ;;  %v367_v14 = vshll.u32 %v247_v8, 16  ;;  %v371_v15 = vshrl.u32 %v247_v8, 16  ;;  %v235_v16 = vld [vmem:[%s2550_s24 + $0x4] sm:$0xf]  ;;  %s3423_s19 = smov (!%p188_p6, %s2156_s19), 15 }
  0x17   : > { %625 = vrot.lane.b32.xlu0 %v572_v13, %s2483_s25  ;;  %v360_v17 = vrot.slane %v358_v9, 4  ;;  %v363_v18 = vrot.slane %v361_v10, 5  ;;  %v262_v19 = vshrl.u32 %v234_v11, 16  ;;  %v265_v20 = vshll.u32 %v234_v11, 16  ;;  %v248_v21 = vld [vmem:[%s2550_s24 + $0x38] sm:$0x1] }
  0x18   : > { %v575_v22 = vsel %vm2552_vm2, %v573_v12, %v574_v5  ;;  %v369_v23 = vrot.slane %v367_v14, 5  ;;  %v271_v24 = vshll.u32 %v235_v16, 16  ;;  %v275_v25 = vshrl.u32 %v235_v16, 16  ;;  %v236_v26 = vld [vmem:[%s2550_s24 + $0x8] sm:$0x1]  ;;  %s2157_s20 = sshll.u32 %s3423_s19, 1 }
  0x19   : > { %627 = vrot.lane.b32.xlu1 %v575_v22, %s2483_s25  ;;  %v364_v27 = vor.u32 %v363_v18, %v360_v17  ;;  %v264_v28 = vrot.slane %v262_v19, 4  ;;  %v267_v29 = vrot.slane %v265_v20, 5  ;;  %v373_v30 = vrot.slane %v371_v15, 4  ;;  %v238_v31 = vld [vmem:[%s2550_s24 + $0x10] sm:$0xf]  ;;  %s192_s22 = sadd.s32 %s2158_s21, %s2157_s20 }
  0x1a   : > { %v273_v33 = vrot.slane %v271_v24, 5  ;;  %v377_v34 = vshll.u32 %v248_v21, 16  ;;  %v277_v35 = vrot.slane %v275_v25, 4  ;;  %v281_v36 = vshll.u32 %v236_v26, 16  ;;  %v239_v40 = vld [vmem:[%s2550_s24 + $0x14] sm:$0x1] }
  0x1b   : > { %v365_v37 = vrot.slane %v364_v27, 4  ;;  %v268_v38 = vor.u32 %v267_v29, %v264_v28  ;;  %v374_v39 = vor.u32 %v373_v30, %v369_v23  ;;  %v295_v41 = vshll.u32 %v238_v31, 16  ;;  %v237_v42 = vld [vmem:[%s2550_s24 + $0xc] sm:$0xf]  ;;  %v250_v47 = vld [vmem:[%s2550_s24 + $0x40] sm:$0xf] }
  0x1c   : > { %v379_v43 = vrot.slane %v377_v34, 5  ;;  %v278_v44 = vor.u32 %v277_v35, %v273_v33  ;;  %v283_v45 = vrot.slane %v281_v36, 5  ;;  %v299_v46 = vshrl.u32 %v238_v31, 16  ;;  %v251_v56 = vld [vmem:[%s2550_s24 + $0x44] sm:$0x1] }
  0x1d   : > { %v370_v48 = vsel %vm2574_vm5, %v365_v37, %v369_v23  ;;  %v269_v49 = vrot.slane %v268_v38, 4  ;;  %v375_v50 = vrot.slane %v374_v39, 4  ;;  %v297_v51 = vrot.slane %v295_v41, 5  ;;  %v249_v61 = vld [vmem:[%s2550_s24 + $0x3c] sm:$0xf] }
  0x1e   : > { %469 = vrot.lane.b32.xlu1 %v370_v48, %s2484_s26  ;;  %v279_v52 = vrot.slane %v278_v44, 4  ;;  %v301_v53 = vrot.slane %v299_v46, 4  ;;  %v305_v54 = vshll.u32 %v239_v40, 16  ;;  %v286_v55 = vshrl.u32 %v237_v42, 16  ;;  %v531_v3 = vld [vmem:[%s2550_s24 + $0x34] sm:$0xf] }
  0x1f   : > { %v274_v57 = vsel %vm2574_vm5, %v269_v49, %v273_v33  ;;  %v380_v58 = vsel %vm2574_vm5, %v375_v50, %v379_v43  ;;  %v289_v59 = vshll.u32 %v237_v42, 16  ;;  %v391_v60 = vshll.u32 %v250_v47, 16  ;;  %v532_v13 = vld [vmem:[%s2550_s24 + $0x38] sm:$0x1]  ;;  %v522_v18 = vld [vmem:[%s2550_s24 + $0x10] sm:$0xf] }
  0x20   : > { %453 = vrot.lane.b32.xlu0 %v274_v57, %s2484_s26  ;;  %v284_v62 = vsel %vm2574_vm5, %v279_v52, %v283_v45  ;;  %v302_v63 = vor.u32 %v301_v53, %v297_v51  ;;  %v307_v1 = vrot.slane %v305_v54, 5  ;;  %v288_v2 = vrot.slane %v286_v55, 4  ;;  %v530_v24 = vld [vmem:[%s2550_s24 + $0x30] sm:$0xe]  ;;  %v523_v30 = vld [vmem:[%s2550_s24 + $0x14] sm:$0x1] }
  0x21   : > { %v291_v4 = vrot.slane %v289_v59, 5  ;;  %v393_v5 = vrot.slane %v391_v60, 5  ;;  %v395_v6 = vshrl.u32 %v250_v47, 16  ;;  %v401_v7 = vshll.u32 %v251_v56, 16  ;;  %v534_v31 = vld [vmem:[%s2550_s24 + $0x40] sm:$0xf] }
  0x22   : > { %471 = vrot.lane.b32.xlu1 %v380_v58, %s2484_s26  ;;  %v303_v8 = vrot.slane %v302_v63, 4  ;;  %v382_v9 = vshrl.u32 %v249_v61, 16  ;;  %v385_v10 = vshll.u32 %v249_v61, 16  ;;  %v599_v14 = vrot.slane %v531_v3, 5  ;;  %v521_v36 = vld [vmem:[%s2550_s24 + $0xc] sm:$0xe] }
  0x23   : > { %v292_v11 = vor.u32 %v291_v4, %v288_v2  ;;  %v397_v12 = vrot.slane %v395_v6, 4  ;;  %v403_v21 = vrot.slane %v401_v7, 5  ;;  %v602_v23 = vrot.slane %v532_v13, 5  ;;  %v535_v41 = vld [vmem:[%s2550_s24 + $0x44] sm:$0x1] }
  0x24   : > { %455 = vrot.lane.b32.xlu0 %v284_v62, %s2484_s26  ;;  %v308_v15 = vsel %vm2574_vm5, %v303_v8, %v307_v1  ;;  %v384_v16 = vrot.slane %v382_v9, 4  ;;  %v387_v17 = vrot.slane %v385_v10, 5  ;;  %v601_v27 = vrot.slane %v599_v14, 4  ;;  %v533_v44 = vld [vmem:[%s2550_s24 + $0x3c] sm:$0xe] }
  0x25   : > { %v293_v19 = vrot.slane %v292_v11, 4  ;;  %v398_v20 = vor.u32 %v397_v12, %v393_v5  ;;  %v578_v28 = vrot.slane %v522_v18, 5  ;;  %v2167_v34 = vrot.slane %v530_v24, 9  ;;  %v2189_v53 = vld [vmem:[%s2550_s24 + $0xc] sm:$0xf] }
  0x26   : > { %459 = vrot.lane.b32.xlu1 %v308_v15, %s2484_s26  ;;  %v388_v22 = vor.u32 %v387_v17, %v384_v16  ;;  %v603_v37 = vsel %vm2552_vm2, %v601_v27, %v602_v23  ;;  %v581_v39 = vrot.slane %v523_v30, 5  ;;  %v606_v40 = vrot.slane %v534_v31, 5  ;;  %v2174_v56 = vld [vmem:[%s2550_s24 + $0x10] sm:$0xf]  ;;  %v2202_v57 = vld [vmem:[%s2550_s24 + $0x40] sm:$0xf] }
  0x27   : > { %v298_v25 = vsel %vm2574_vm5, %v293_v19, %v297_v51  ;;  %v399_v26 = vrot.slane %v398_v20, 4  ;;  %v580_v38 = vrot.slane %v578_v28, 4  ;;  %v600_v42 = vsel %vm2552_vm2, %v2167_v34, %v599_v14  ;;  %v2190_v51 = vld [vmem:[%s2550_s24 + $0x10] sm:$0xf]  ;;  %v2173_v60 = vld [vmem:[%s2550_s24 + $0xc] sm:$0xf] }
  0x28   : > { %457 = vrot.lane.b32.xlu0 %v298_v25, %s2484_s26  ;;  %v389_v29 = vrot.slane %v388_v22, 4  ;;  %v2164_v43 = vrot.slane %v521_v36, 9  ;;  %v608_v46 = vrot.slane %v606_v40, 4  ;;  %v609_v47 = vrot.slane %v535_v41, 5  ;;  %v2201_v61 = vld [vmem:[%s2550_s24 + $0x3c] sm:$0xf] }
  0x29   : > { %v404_v33 = vsel %vm2574_vm5, %v399_v26, %v403_v21  ;;  %v582_v45 = vsel %vm2552_vm2, %v580_v38, %v581_v39  ;;  %v2168_v49 = vrot.slane %v533_v44, 9  ;;  %v825_v54 = vshll.u32 %v2190_v51, 16  ;;  %v2182_v3 = vld [vmem:[%s2550_s24 + $0x40] sm:$0xf]  ;;  %v2191_v4 = vld [vmem:[%s2550_s24 + $0x14] sm:$0x1] }
  0x2a   : > { %475 = vrot.lane.b32.xlu1 %v404_v33, %s2484_s26  ;;  %v394_v35 = vsel %vm2574_vm5, %v389_v29, %v393_v5  ;;  %v579_v48 = vsel %vm2552_vm2, %v2164_v43, %v578_v28  ;;  %v610_v50 = vsel %vm2552_vm2, %v608_v46, %v609_v47  ;;  %v829_v55 = vshrl.u32 %v2190_v51, 16  ;;  %v2193_v9 = vld [vmem:[%s2550_s24 + $0x1c] sm:$0xf]  ;;  %v2192_v15 = vld [vmem:[%s2550_s24 + $0x18] sm:$0xf] }
  0x2b   : > { %v607_v52 = vsel %vm2552_vm2, %v2168_v49, %v606_v40  ;;  %v816_v58 = vshrl.u32 %v2189_v53, 16  ;;  %v819_v59 = vshll.u32 %v2189_v53, 16  ;;  %v2641_v62 = vrot.slane %v825_v54, 5  ;;  %v2181_v10 = vld [vmem:[%s2550_s24 + $0x3c] sm:$0xf] }
  0x2c   : > { %473 = vrot.lane.b32.xlu0 %v394_v35, %s2484_s26  ;;  %v831_v63 = vrot.slane %v829_v55, 4  ;;  %v921_v1 = vshll.u32 %v2202_v57, 16  ;;  %v925_v2 = vshrl.u32 %v2202_v57, 16  ;;  %v912_v7 = vshrl.u32 %v2201_v61, 16  ;;  %v2176_v16 = vld [vmem:[%s2550_s24 + $0x1c] sm:$0xf] }
  0x2d   : > { %v818_v5 = vrot.slane %v816_v58, 4  ;;  %v821_v6 = vrot.slane %v819_v59, 5  ;;  %v915_v8 = vshll.u32 %v2201_v61, 16  ;;  %v835_v12 = vshll.u32 %v2191_v4, 16  ;;  %v2203_v17 = vld [vmem:[%s2550_s24 + $0x44] sm:$0x1] }
  0x2e   : > { %643 = vrot.lane.b32.xlu1 %v603_v37, %s2483_s25  ;;  %v832_v11 = vor.u32 %v831_v63, %v2641_v62  ;;  %v2650_v13 = vrot.slane %v921_v1, 5  ;;  %v927_v14 = vrot.slane %v925_v2, 4  ;;  %v849_v18 = vshll.u32 %v2193_v9, 16  ;;  %v2205_v23 = vld [vmem:[%s2550_s24 + $0x4c] sm:$0xf] }
  0x2f   : > { %v853_v19 = vshrl.u32 %v2193_v9, 16  ;;  %v822_v20 = vor.u32 %v821_v6, %v818_v5  ;;  %v914_v21 = vrot.slane %v912_v7, 4  ;;  %v917_v22 = vrot.slane %v915_v8, 5  ;;  %v2175_v24 = vld [vmem:[%s2550_s24 + $0x18] sm:$0xf] }
  0x30   : > { %641 = vrot.lane.b32.xlu0 %v600_v42, %s2483_s25  ;;  %v2184_v25 = vld [vmem:[%s2550_s24 + $0x4c] sm:$0xf]  ;;  %v840_v26 = vshrl.u32 %v2192_v15, 16  ;;  %v843_v27 = vshll.u32 %v2192_v15, 16  ;;  %v833_v28 = vrot.slane %v832_v11, 4  ;;  %v837_v29 = vrot.slane %v835_v12, 5 }
  0x31   : > { %v928_v30 = vor.u32 %v927_v14, %v2650_v13  ;;  %v931_v31 = vshll.u32 %v2203_v17, 16  ;;  %v2204_v33 = vld [vmem:[%s2550_s24 + $0x48] sm:$0xf]  ;;  %v2194_v34 = vld [vmem:[%s2550_s24 + $0x20] sm:$0x1]  ;;  %v851_v35 = vrot.slane %v849_v18, 5  ;;  %v918_v40 = vor.u32 %v917_v22, %v914_v21 }
  0x32   : > { %631 = vrot.lane.b32.xlu1 %v582_v45, %s2483_s25  ;;  %v855_v36 = vrot.slane %v853_v19, 4  ;;  %v945_v37 = vshll.u32 %v2205_v23, 16  ;;  %v949_v38 = vshrl.u32 %v2205_v23, 16  ;;  %v823_v39 = vrot.slane %v822_v20, 4  ;;  %v2183_v41 = vld [vmem:[%s2550_s24 + $0x48] sm:$0xf] }
  0x33   : > { %v842_v42 = vrot.slane %v840_v26, 4  ;;  %v845_v43 = vrot.slane %v843_v27, 5  ;;  %v936_v44 = vshrl.u32 %v2204_v33, 16  ;;  %v939_v45 = vshll.u32 %v2204_v33, 16  ;;  %v2206_v54 = vld [vmem:[%s2550_s24 + $0x50] sm:$0x1] }
  0x34   : > { %629 = vrot.lane.b32.xlu0 %v579_v48, %s2483_s25  ;;  %v838_v46 = vsel %vm2574_vm5, %v833_v28, %v837_v29  ;;  %v933_v47 = vrot.slane %v931_v31, 5  ;;  %v859_v48 = vshll.u32 %v2194_v34, 16  ;;  %v929_v49 = vrot.slane %v928_v30, 4  ;;  %v2215_v9 = vld [vmem:[%s2550_s24 + $0x14] sm:$0x1] }
  0x35   : > { %v947_v51 = vrot.slane %v945_v37, 5  ;;  %v828_v53 = vsel %vm2574_vm5, %v823_v39, %v2641_v62  ;;  %v919_v55 = vrot.slane %v918_v40, 4  ;;  %v938_v57 = vrot.slane %v936_v44, 4  ;;  %v2214_v62 = vld [vmem:[%s2550_s24 + $0x10] sm:$0xf] }
  0x36   : > { %647 = vrot.lane.b32.xlu1 %v610_v50, %s2483_s25  ;;  %v856_v50 = vor.u32 %v855_v36, %v851_v35  ;;  %v941_v58 = vrot.slane %v939_v45, 5  ;;  %v861_v59 = vrot.slane %v859_v48, 5  ;;  %v955_v1 = vshll.u32 %v2206_v54, 16  ;;  %v2213_v14 = vld [vmem:[%s2550_s24 + $0xc] sm:$0xe] }
  0x37   : > { %v924_v2 = vsel %vm2574_vm5, %v919_v55, %v2650_v13  ;;  %v1122_v8 = vrot.slane %v2214_v62, 5  ;;  %v209_v13 = vld [vmem:[%s2550_s24 + $0x30] sm:$0xf]  ;;  %v201_v15 = vld [vmem:[%s2550_s24] sm:$0xf]  ;;  %v1125_v18 = vrot.slane %v2215_v9, 5 }
  0x38   : > { %645 = vrot.lane.b32.xlu0 %v607_v52, %s2483_s25  ;;  %v951_v52 = vrot.slane %v949_v38, 4  ;;  %v857_v61 = vrot.slane %v856_v50, 4  ;;  %v942_v4 = vor.u32 %v941_v58, %v938_v57  ;;  %v957_v7 = vrot.slane %v955_v1, 5  ;;  %226 = vst.msk [vmem:[#allocation2 + $0x20] sm:$0xf] %vm217_vm6, %v209_v13 }
  0x39   : > { %v1124_v17 = vrot.slane %v1122_v8, 4  ;;  %218 = vst.msk [vmem:[#allocation2] sm:$0xf] %vm217_vm6, %v201_v15  ;;  %v2227_v20 = vld [vmem:[%s2550_s24 + $0x44] sm:$0x1]  ;;  %v2237_v23 = vrot.slane %v2213_v14, 9 }
  0x3a   : > { %728 = vrot.lane.b32.xlu1 %v2174_v56, %s2485_s27  ;;  %v846_v56 = vor.u32 %v845_v43, %v842_v42  ;;  %v952_v63 = vor.u32 %v951_v52, %v947_v51  ;;  %v862_v5 = vsel %vm2574_vm5, %v857_v61, %v861_v59  ;;  %v943_v12 = vrot.slane %v942_v4, 4  ;;  %v2217_v21 = vld [vmem:[%s2550_s24 + $0x1c] sm:$0xf]  ;;  %v2218_v31 = vld [vmem:[%s2550_s24 + $0x20] sm:$0x1] }
  0x3b   : > { %v2225_v26 = vld [vmem:[%s2550_s24 + $0x3c] sm:$0xe]  ;;  %v1126_v27 = vsel %vm2552_vm2, %v1124_v17, %v1125_v18  ;;  %v1153_v29 = vrot.slane %v2227_v20, 5  ;;  %v1129_v30 = vrot.slane %v2217_v21, 5  ;;  %v2229_v33 = vld [vmem:[%s2550_s24 + $0x4c] sm:$0xf]  ;;  %v1123_v34 = vsel %vm2552_vm2, %v2237_v23, %v1122_v8 }
  0x3c   : > { %726 = vrot.lane.b32.xlu0 %v2173_v60, %s2485_s27  ;;  %v934_v60 = vsel %vm2574_vm5, %v929_v49, %v933_v47  ;;  %v953_v6 = vrot.slane %v952_v63, 4  ;;  %v948_v22 = vsel %vm2574_vm5, %v943_v12, %v947_v51  ;;  %v204_v36 = vld [vmem:[%s2550_s24 + $0x10] sm:$0xf]  ;;  %v2216_v37 = vld [vmem:[%s2550_s24 + $0x18] sm:$0xe]  ;;  %v1157_v42 = vrot.slane %v2229_v33, 5 }
  0x3d   : > { %221 = vst.msk [vmem:[#allocation2 + $0xc] sm:$0xf] %vm217_vm6, %v204_v36  ;;  %v203_v38 = vld [vmem:[%s2550_s24 + $0xc] sm:$0xf]  ;;  %v1131_v40 = vrot.slane %v1129_v30, 4  ;;  %v2238_v45 = vrot.slane %v2216_v37, 9 }
  0x3e   : > { %744 = vrot.lane.b32.xlu1 %v2182_v3, %s2485_s27  ;;  %v847_v3 = vrot.slane %v846_v56, 4  ;;  %220 = vst.msk [vmem:[#allocation2 + $0x8] sm:$0xf] %vm217_vm6, %v203_v38  ;;  %v2230_v43 = vld [vmem:[%s2550_s24 + $0x50] sm:$0x1]  ;;  %v1159_v50 = vrot.slane %v1157_v42, 4 }
  0x3f   : > { %v2228_v47 = vld [vmem:[%s2550_s24 + $0x48] sm:$0xe]  ;;  %v211_v48 = vld [vmem:[%s2550_s24 + $0x3c] sm:$0xf]  ;;  %v1160_v51 = vrot.slane %v2230_v43, 5  ;;  %v1130_v52 = vsel %vm2552_vm2, %v2238_v45, %v1129_v30 }
  0x40   : > { %742 = vrot.lane.b32.xlu0 %v2181_v10, %s2485_s27  ;;  %v2226_v10 = vld [vmem:[%s2550_s24 + $0x40] sm:$0xf]  ;;  %v852_v11 = vsel %vm2574_vm5, %v847_v3, %v851_v35  ;;  %v2241_v35 = vrot.slane %v2225_v26, 9  ;;  %228 = vst.msk [vmem:[#allocation2 + $0x28] sm:$0xf] %vm217_vm6, %v211_v48 }
  0x41   : > { %v1150_v19 = vrot.slane %v2226_v10, 5  ;;  %v1161_v54 = vsel %vm2552_vm2, %v1159_v50, %v1160_v51  ;;  %v2264_v55 = vld [vmem:[%s2550_s24 + $0x1c] sm:$0xf]  ;;  %v2263_v57 = vld [vmem:[%s2550_s24 + $0x18] sm:$0xf] }
  0x42   : > { %732 = vrot.lane.b32.xlu1 %v2176_v16, %s2485_s27  ;;  %v958_v16 = vsel %vm2574_vm5, %v953_v6, %v957_v7  ;;  %v1376_v58 = vshll.u32 %v2264_v55, 16  ;;  %v1380_v59 = vshrl.u32 %v2264_v55, 16  ;;  %v2276_v61 = vld [vmem:[%s2550_s24 + $0x4c] sm:$0xf]  ;;  %v1367_v63 = vshrl.u32 %v2263_v57, 16 }
  0x43   : > { %v1152_v28 = vrot.slane %v1150_v19, 4  ;;  %v1151_v44 = vsel %vm2552_vm2, %v2241_v35, %v1150_v19  ;;  %v1370_v1 = vshll.u32 %v2263_v57, 16  ;;  %v2247_v62 = vld [vmem:[%s2550_s24 + $0x18] sm:$0xf]  ;;  %v1476_v6 = vshrl.u32 %v2276_v61, 16 }
  0x44   : > { %730 = vrot.lane.b32.xlu0 %v2175_v24, %s2485_s27  ;;  %v210_v24 = vld [vmem:[%s2550_s24 + $0x34] sm:$0xf]  ;;  %v2753_v3 = vrot.slane %v1376_v58, 5  ;;  %v1382_v4 = vrot.slane %v1380_v59, 4  ;;  %v2256_v7 = vld [vmem:[%s2550_s24 + $0x4c] sm:$0xf] }
  0x45   : > { %227 = vst.msk [vmem:[#allocation2 + $0x24] sm:$0xf] %vm217_vm6, %v210_v24  ;;  %v1154_v39 = vsel %vm2552_vm2, %v1152_v28, %v1153_v29  ;;  %v2265_v8 = vld [vmem:[%s2550_s24 + $0x20] sm:$0x1]  ;;  %v1369_v9 = vrot.slane %v1367_v63, 4  ;;  %v1372_v10 = vrot.slane %v1370_v1, 5 }
  0x46   : > { %748 = vrot.lane.b32.xlu1 %v2184_v25, %s2485_s27  ;;  %v202_v25 = vld [vmem:[%s2550_s24 + $0x4] sm:$0xf]  ;;  %v2267_v13 = vld [vmem:[%s2550_s24 + $0x28] sm:$0xf]  ;;  %v1383_v15 = vor.u32 %v1382_v4, %v2753_v3  ;;  %v1478_v18 = vrot.slane %v1476_v6, 4 }
  0x47   : > { %219 = vst.msk [vmem:[#allocation2 + $0x4] sm:$0xf] %vm217_vm6, %v202_v25  ;;  %v2255_v14 = vld [vmem:[%s2550_s24 + $0x48] sm:$0xf]  ;;  %v2266_v19 = vld [vmem:[%s2550_s24 + $0x24] sm:$0xf]  ;;  %v1373_v24 = vor.u32 %v1372_v10, %v1369_v9 }
  0x48   : > { %746 = vrot.lane.b32.xlu0 %v2183_v41, %s2485_s27  ;;  %v1132_v41 = vrot.slane %v2218_v31, 5  ;;  %v2250_v20 = vld [vmem:[%s2550_s24 + $0x28] sm:$0xf]  ;;  %v2277_v21 = vld [vmem:[%s2550_s24 + $0x50] sm:$0x1]  ;;  %v1404_v23 = vshrl.u32 %v2267_v13, 16 }
  0x49   : > { %v2249_v28 = vld [vmem:[%s2550_s24 + $0x24] sm:$0xf]  ;;  %v2258_v29 = vld [vmem:[%s2550_s24 + $0x58] sm:$0xf]  ;;  %v1391_v30 = vshrl.u32 %v2266_v19, 16  ;;  %v1394_v31 = vshll.u32 %v2266_v19, 16 }
  0x4a   : > { %1009 = vrot.lane.b32.xlu1 %v838_v46, %s2486_s28  ;;  %v212_v46 = vld [vmem:[%s2550_s24 + $0x40] sm:$0xf]  ;;  %v1133_v49 = vsel %vm2552_vm2, %v1131_v40, %v1132_v41  ;;  %v1384_v33 = vrot.slane %v1383_v15, 4  ;;  %v1482_v36 = vshll.u32 %v2277_v21, 16  ;;  %v2278_v37 = vld [vmem:[%s2550_s24 + $0x54] sm:$0xf] }
  0x4b   : > { %229 = vst.msk [vmem:[#allocation2 + $0x2c] sm:$0xf] %vm217_vm6, %v212_v46  ;;  %v2268_v38 = vld [vmem:[%s2550_s24 + $0x2c] sm:$0x1]  ;;  %v1406_v40 = vrot.slane %v1404_v23, 4  ;;  %v1374_v43 = vrot.slane %v1373_v24, 4 }
  0x4c   : > { %1007 = vrot.lane.b32.xlu0 %v828_v53, %s2486_s28  ;;  %v2242_v53 = vrot.slane %v2228_v47, 9  ;;  %v2257_v45 = vld [vmem:[%s2550_s24 + $0x54] sm:$0xf]  ;;  %v1393_v46 = vrot.slane %v1391_v30, 4  ;;  %v1396_v47 = vrot.slane %v1394_v31, 5  ;;  %v1487_v48 = vshrl.u32 %v2278_v37, 16 }
  0x4d   : > { %v1484_v51 = vrot.slane %v1482_v36, 5  ;;  %v2280_v55 = vld [vmem:[%s2550_s24 + $0x5c] sm:$0x1]  ;;  %v1379_v58 = vsel %vm2574_vm5, %v1374_v43, %v2753_v3  ;;  %v253_v19 = vld [vmem:[%s2550_s24 + $0x4c] sm:$0xf] }
  0x4e   : > { %1025 = vrot.lane.b32.xlu1 %v934_v60, %s2486_s28  ;;  %v1158_v56 = vsel %vm2552_vm2, %v2242_v53, %v1157_v42  ;;  %v2248_v60 = vld [vmem:[%s2550_s24 + $0x1c] sm:$0xf]  ;;  %v1506_v1 = vshll.u32 %v2280_v55, 16  ;;  %v252_v24 = vld [vmem:[%s2550_s24 + $0x48] sm:$0xf] }
  0x4f   : > { %v2288_v6 = vld [vmem:[%s2550_s24 + $0x1c] sm:$0xf]  ;;  %v2301_v31 = vld [vmem:[%s2550_s24 + $0x50] sm:$0x1]  ;;  %v242_v36 = vld [vmem:[%s2550_s24 + $0x20] sm:$0x1] }
  0x50   : > { %1023 = vrot.lane.b32.xlu0 %v924_v2, %s2486_s28  ;;  %v2275_v2 = vld [vmem:[%s2550_s24 + $0x48] sm:$0xf]  ;;  %v241_v3 = vld [vmem:[%s2550_s24 + $0x1c] sm:$0xf]  ;;  %v1508_v10 = vrot.slane %v1506_v1, 5 }
  0x51   : > { %v1466_v12 = vshll.u32 %v2275_v2, 16  ;;  %v2842_v1 = vld [vmem:[%s2550_s24 + $0x28] sm:$0xf] }
  0x52   : > { %1013 = vrot.lane.b32.xlu1 %v862_v5, %s2486_s28  ;;  %v1472_v5 = vshll.u32 %v2276_v61, 16  ;;  %v1489_v61 = vrot.slane %v1487_v48, 4 }
  0x53   : > { %v1468_v26 = vrot.slane %v1466_v12, 5  ;;  %v1673_v12 = vrot.slane %v2288_v6, 5 }
  0x54   : > { %1011 = vrot.lane.b32.xlu0 %v852_v11, %s2486_s28  ;;  %v1463_v11 = vshrl.u32 %v2275_v2, 16  ;;  %v2762_v17 = vrot.slane %v1472_v5, 5 }
  0x56   : > { %1029 = vrot.lane.b32.xlu1 %v958_v16, %s2486_s28  ;;  %v1386_v16 = vshll.u32 %v2265_v8, 16  ;;  %v1465_v25 = vrot.slane %v1463_v11, 4  ;;  %v1479_v35 = vor.u32 %v1478_v18, %v2762_v17  ;;  %v2289_v11 = vld [vmem:[%s2550_s24 + $0x20] sm:$0x1]  ;;  %v323_v18 = vshrl.u32 %v241_v3, 16 }
  0x58   : > { %1027 = vrot.lane.b32.xlu0 %v948_v22, %s2486_s28  ;;  %v1400_v22 = vshll.u32 %v2267_v13, 16  ;;  %v1480_v53 = vrot.slane %v1479_v35, 4  ;;  %v240_v13 = vld [vmem:[%s2550_s24 + $0x18] sm:$0xf]  ;;  %v325_v35 = vrot.slane %v323_v18, 4 }
  0x59   : > { %v313_v23 = vshll.u32 %v240_v13, 16 }
  0x5a   : > { %1178 = vrot.lane.b32.xlu1 %v1126_v27, %s2487_s29  ;;  %v2279_v27 = vld [vmem:[%s2550_s24 + $0x58] sm:$0xf] }
  0x5b   : > { %v1496_v41 = vshll.u32 %v2279_v27, 16  ;;  %v1500_v42 = vshrl.u32 %v2279_v27, 16  ;;  %v2287_v27 = vld [vmem:[%s2550_s24 + $0x18] sm:$0xe]  ;;  %v315_v43 = vrot.slane %v313_v23, 5 }
  0x5c   : > { %1176 = vrot.lane.b32.xlu0 %v1123_v34, %s2487_s29  ;;  %v1388_v34 = vrot.slane %v1386_v16, 5  ;;  %v319_v16 = vshll.u32 %v241_v3, 16 }
  0x5d   : > { %v1502_v57 = vrot.slane %v1500_v42, 4 }
  0x5e   : > { %1194 = vrot.lane.b32.xlu1 %v1154_v39, %s2487_s29  ;;  %v2775_v39 = vrot.slane %v1400_v22, 5  ;;  %v1389_v50 = vsel %vm2574_vm5, %v1384_v33, %v1388_v34  ;;  %v310_v22 = vshrl.u32 %v240_v13, 16  ;;  %v2817_v34 = vrot.slane %v319_v16, 5  ;;  %v2856_v13 = vld [vmem:[%s2550_s24 + $0x58] sm:$0xf] }
  0x60   : > { %1192 = vrot.lane.b32.xlu0 %v1151_v44, %s2487_s29  ;;  %v1469_v44 = vor.u32 %v1468_v26, %v1465_v25  ;;  %v1675_v25 = vrot.slane %v1673_v12, 4  ;;  %v1676_v26 = vrot.slane %v2289_v11, 5  ;;  %v312_v42 = vrot.slane %v310_v22, 4 }
  0x62   : > { %1182 = vrot.lane.b32.xlu1 %v1133_v49, %s2487_s29  ;;  %v1490_v49 = vshll.u32 %v2278_v37, 16  ;;  %v1470_v59 = vrot.slane %v1469_v44, 4  ;;  %v406_v37 = vshrl.u32 %v252_v24, 16  ;;  %v1704_v44 = vrot.slane %v2301_v31, 5 }
  0x63   : > { %v1677_v48 = vsel %vm2552_vm2, %v1675_v25, %v1676_v26 }
  0x64   : > { %1180 = vrot.lane.b32.xlu0 %v1130_v52, %s2487_s29  ;;  %v1410_v52 = vshll.u32 %v2268_v38, 16  ;;  %v1492_v63 = vrot.slane %v1490_v49, 5  ;;  %v409_v38 = vshll.u32 %v252_v24, 16  ;;  %v205_v24 = vld [vmem:[%s2550_s24 + $0x18] sm:$0xf] }
  0x65   : > { %222 = vst.msk [vmem:[#allocation2 + $0x10] sm:$0xf] %vm217_vm6, %v205_v24  ;;  %v537_v24 = vld [vmem:[%s2550_s24 + $0x4c] sm:$0xf] }
  0x66   : > { %1198 = vrot.lane.b32.xlu1 %v1161_v54, %s2487_s29  ;;  %v1407_v54 = vor.u32 %v1406_v40, %v2775_v39  ;;  %v1412_v4 = vrot.slane %v1410_v52, 5  ;;  %v1493_v9 = vor.u32 %v1492_v63, %v1489_v61  ;;  %v2311_v40 = vrot.slane %v2287_v27, 9 }
  0x67   : > { %v408_v52 = vrot.slane %v406_v37, 4 }
  0x68   : > { %1196 = vrot.lane.b32.xlu0 %v1158_v56, %s2487_s29  ;;  %v2784_v56 = vrot.slane %v1496_v41, 5  ;;  %v1408_v2 = vrot.slane %v1407_v54, 4  ;;  %v1494_v21 = vrot.slane %v1493_v9, 4  ;;  %v2299_v41 = vld [vmem:[%s2550_s24 + $0x48] sm:$0xe]  ;;  %v1674_v54 = vsel %vm2552_vm2, %v2311_v40, %v1673_v12 }
  0x69   : > { %v2315_v55 = vrot.slane %v2299_v41, 9  ;;  %v1680_v9 = vrot.slane %v2842_v1, 5  ;;  %v2290_v12 = vld [vmem:[%s2550_s24 + $0x24] sm:$0xe]  ;;  %v245_v40 = vld [vmem:[%s2550_s24 + $0x2c] sm:$0x1] }
  0x6a   : > { %1279 = vrot.lane.b32.xlu1 %v2248_v60, %s2488_s30  ;;  %v1397_v60 = vor.u32 %v1396_v47, %v1393_v46  ;;  %v1503_v5 = vor.u32 %v1502_v57, %v2784_v56  ;;  %v213_v41 = vld [vmem:[%s2550_s24 + $0x48] sm:$0xf] }
  0x6b   : > { %v1682_v27 = vrot.slane %v1680_v9, 4  ;;  %230 = vst.msk [vmem:[#allocation2 + $0x30] sm:$0xf] %vm217_vm6, %v213_v41  ;;  %v536_v41 = vld [vmem:[%s2550_s24 + $0x48] sm:$0xe] }
  0x6c   : > { %1277 = vrot.lane.b32.xlu0 %v2247_v62, %s2488_s30  ;;  %v1485_v62 = vsel %vm2574_vm5, %v1480_v53, %v1484_v51  ;;  %v1398_v8 = vrot.slane %v1397_v60, 4  ;;  %v1504_v15 = vrot.slane %v1503_v5, 4  ;;  %v329_v51 = vshll.u32 %v242_v36, 16  ;;  %v214_v36 = vld [vmem:[%s2550_s24 + $0x4c] sm:$0xf] }
  0x6d   : > { %v411_v53 = vrot.slane %v409_v38, 5  ;;  %231 = vst.msk [vmem:[#allocation2 + $0x34] sm:$0xf] %vm217_vm6, %v214_v36  ;;  %v538_v36 = vld [vmem:[%s2550_s24 + $0x50] sm:$0x1] }
  0x6e   : > { %1295 = vrot.lane.b32.xlu1 %v2256_v7, %s2488_s30  ;;  %v1475_v7 = vsel %vm2574_vm5, %v1470_v59, %v2762_v17  ;;  %v2300_v17 = vld [vmem:[%s2550_s24 + $0x4c] sm:$0xf]  ;;  %v1509_v30 = vsel %vm2574_vm5, %v1504_v15, %v1508_v10  ;;  %v331_v63 = vrot.slane %v329_v51, 5  ;;  %v243_v10 = vld [vmem:[%s2550_s24 + $0x24] sm:$0xf] }
  0x6f   : > { %v1701_v33 = vrot.slane %v2300_v17, 5  ;;  %v206_v17 = vld [vmem:[%s2550_s24 + $0x1c] sm:$0xf]  ;;  %v334_v22 = vshrl.u32 %v243_v10, 16  ;;  %v337_v23 = vshll.u32 %v243_v10, 16  ;;  %v2436_v10 = vld [vmem:[%s3403_s1] sm:$0xff]  }
  0x70   : > { %1293 = vrot.lane.b32.xlu0 %v2255_v14, %s2488_s30  ;;  %v1413_v14 = vsel %vm2574_vm5, %v1408_v2, %v1412_v4  ;;  %v412_v2 = vor.u32 %v411_v53, %v408_v52  ;;  %v244_v4 = vld [vmem:[%s2550_s24 + $0x28] sm:$0xf]  ;;  %223 = vst.msk [vmem:[#allocation2 + $0x14] sm:$0xf] %vm217_vm6, %v206_v17  ;;  %v353_v52 = vshll.u32 %v245_v40, 16 }
  0x71   : > { %v1703_v49 = vrot.slane %v1701_v33, 4  ;;  %v1702_v5 = vsel %vm2552_vm2, %v2315_v55, %v1701_v33  ;;  %v347_v15 = vshrl.u32 %v244_v4, 16  ;;  %v2433_v55 = vld [vmem:[%s3403_s1 + $0x10] ss:$0 sps:$4 sm:$0x33]  }
  0x72   : > { %1283 = vrot.lane.b32.xlu1 %v2250_v20, %s2488_s30  ;;  %v1403_v20 = vsel %vm2574_vm5, %v1398_v8, %v2775_v39  ;;  %v1499_v39 = vsel %vm2574_vm5, %v1494_v21, %v2784_v56  ;;  %v316_v56 = vor.u32 %v315_v43, %v312_v42  ;;  %v2292_v8 = vld [vmem:[%s2550_s24 + $0x2c] sm:$0x1]  ;;  %v413_v18 = vrot.slane %v412_v2, 4  ;;  %v2302_v42 = vld [vmem:[%s2550_s24 + $0x54] sm:$0xe]  ;;  %2381 = vmatprep.subr.msk.bf16.mxu0 %vm1900_vm9, %v2433_v55 }
  0x73   : > { %v1705_v60 = vsel %vm2552_vm2, %v1703_v49, %v1704_v44  ;;  %v1683_v21 = vrot.slane %v2292_v8, 5  ;;  %v349_v33 = vrot.slane %v347_v15, 4  ;;  %v336_v43 = vrot.slane %v334_v22, 4  ;;  %2382 = vmatprep.subr.msk.bf16.mxu1 %vm1900_vm9, %v2433_v55  ;;  %v208_v15 = vld [vmem:[%s2550_s24 + $0x28] sm:$0xf] }
  0x74   : > { %1281 = vrot.lane.b32.xlu0 %v2249_v28, %s2488_s30  ;;  %v415_v28 = vshll.u32 %v253_v19, 16  ;;  %v317_v6 = vrot.slane %v316_v56, 4  ;;  %v339_v44 = vrot.slane %v337_v23, 5  ;;  %225 = vst.msk [vmem:[#allocation2 + $0x1c] sm:$0xf] %vm217_vm6, %v208_v15 }
  0x75   : > { %v526_v23 = vld [vmem:[%s2550_s24 + $0x20] sm:$0x1] }
  0x76   : > { %1299 = vrot.lane.b32.xlu1 %v2258_v29, %s2488_s30  ;;  %v419_v29 = vshrl.u32 %v253_v19, 16  ;;  %v2827_v46 = vrot.slane %v415_v28, 5  ;;  %v256_v19 = vld [vmem:[%s2550_s24 + $0x58] sm:$0xf]  ;;  %v2304_v28 = vld [vmem:[%s2550_s24 + $0x5c] sm:$0x1] }
  0x78   : > { %1297 = vrot.lane.b32.xlu0 %v2257_v45, %s2488_s30  ;;  %v254_v45 = vld [vmem:[%s2550_s24 + $0x50] sm:$0x1]  ;;  %v421_v47 = vrot.slane %v419_v29, 4  ;;  %v1708_v29 = vrot.slane %v2856_v13, 5  ;;  %v418_v38 = vsel %vm2574_vm5, %v413_v18, %v2827_v46 }
  0x79   : > { %v425_v57 = vshll.u32 %v254_v45, 16 }
  0x7a   : > { %1560 = vrot.lane.b32.xlu1 %v1389_v50, %s2489_s4  ;;  %v326_v50 = vor.u32 %v325_v35, %v2817_v34  ;;  %v443_v35 = vshrl.u32 %v256_v19, 16  ;;  %v1710_v49 = vrot.slane %v1708_v29, 4 }
  0x7b   : > { %v427_v3 = vrot.slane %v425_v57, 5 }
  0x7c   : > { %1558 = vrot.lane.b32.xlu0 %v1379_v58, %s2489_s4  ;;  %v422_v58 = vor.u32 %v421_v47, %v2827_v46  ;;  %v327_v61 = vrot.slane %v326_v50, 4  ;;  %v1684_v46 = vsel %vm2552_vm2, %v1682_v27, %v1683_v21  ;;  %v1711_v50 = vrot.slane %v2304_v28, 5  ;;  %v216_v21 = vld [vmem:[%s2550_s24 + $0x58] sm:$0xf] }
  0x7d   : > { %233 = vst.msk [vmem:[#allocation2 + $0x3c] sm:$0xf] %vm217_vm6, %v216_v21  ;;  %v2207_v21 = vld [vmem:[%s2550_s24 + $0x54] sm:$0xf] }
  0x7e   : > { %1576 = vrot.lane.b32.xlu1 %v1485_v62, %s2489_s4  ;;  %v332_v11 = vsel %vm2574_vm5, %v327_v61, %v331_v63  ;;  %v2435_v61 = vld [vmem:[%s3403_s1 + $0x8] sm:$0xff]   ;;  %v340_v63 = vor.u32 %v339_v44, %v336_v43  ;;  %v616_v44 = vrot.slane %v538_v36, 5  ;;  %v2185_v36 = vld [vmem:[%s2550_s24 + $0x54] sm:$0xf] }
  0x80   : > { %1574 = vrot.lane.b32.xlu0 %v1475_v7, %s2489_s4  ;;  %v423_v7 = vrot.slane %v422_v58, 4  ;;  %v2316_v58 = vrot.slane %v2302_v42, 9 }
  0x82   : > { %1564 = vrot.lane.b32.xlu1 %v1413_v14, %s2489_s4  ;;  %v343_v14 = vshll.u32 %v244_v4, 16  ;;  %v428_v26 = vsel %vm2574_vm5, %v423_v7, %v427_v3  ;;  %v1712_v4 = vsel %vm2552_vm2, %v1710_v49, %v1711_v50  ;;  %v2169_v50 = vrot.slane %v536_v41, 9 }
  0x84   : > { %1562 = vrot.lane.b32.xlu0 %v1403_v20, %s2489_s4  ;;  %v322_v20 = vsel %vm2574_vm5, %v317_v6, %v2817_v34  ;;  %v2877_v31 = vrot.slane %v343_v14, 5  ;;  %v439_v34 = vshll.u32 %v256_v19, 16  ;;  %v355_v6 = vrot.slane %v353_v52, 5  ;;  %v527_v52 = vld [vmem:[%s2550_s24 + $0x24] sm:$0xe] }
  0x86   : > { %1580 = vrot.lane.b32.xlu1 %v1509_v30, %s2489_s4  ;;  %v255_v30 = vld [vmem:[%s2550_s24 + $0x54] sm:$0xf]  ;;  %v350_v51 = vor.u32 %v349_v33, %v2877_v31  ;;  %v2898_v53 = vrot.slane %v439_v34, 5  ;;  %v588_v34 = vrot.slane %v526_v23, 5 }
  0x87   : > { %v430_v45 = vshrl.u32 %v255_v30, 16  ;;  %v433_v47 = vshll.u32 %v255_v30, 16 }
  0x88   : > { %1578 = vrot.lane.b32.xlu0 %v1499_v39, %s2489_s4  ;;  %v2312_v39 = vrot.slane %v2290_v12, 9  ;;  %v341_v12 = vrot.slane %v340_v63, 4 }
  0x89   : > { %v626_v62 = vpop.permute.xlu0 %625  ;;  %v435_v2 = vrot.slane %v433_v47, 5 }
  0x8a   : > { %1729 = vrot.lane.b32.xlu1 %v1677_v48, %s2490_s5  ;;  %v1681_v57 = vsel %vm2552_vm2, %v2312_v39, %v1680_v9  ;;  %v2922_v9 = vld [vmem:[%s2550_s24 + $0x1c] sm:$0xf] }
  0x8b   : > { %v2837_v59 = vpop.permute.xlu1 %627 }
  0x8c   : > { %1727 = vrot.lane.b32.xlu0 %v1674_v54, %s2490_s5  ;;  %v445_v54 = vrot.slane %v443_v35, 4 }
  0x8e   : > { %1745 = vrot.lane.b32.xlu1 %v1705_v60, %s2490_s5  ;;  %v257_v60 = vld [vmem:[%s2550_s24 + $0x5c] sm:$0x1]  ;;  %v446_v3 = vor.u32 %v445_v54, %v2898_v53 }
  0x8f   : > { %v449_v7 = vshll.u32 %v257_v60, 16 }
  0x90   : > { %1743 = vrot.lane.b32.xlu0 %v1702_v5, %s2490_s5  ;;  %v470_v16 = vpop.permute.xlu1 %469  ;;  %v351_v5 = vrot.slane %v350_v51, 4  ;;  %v447_v19 = vrot.slane %v446_v3, 4 }
  0x91   : > { %510 = vst.msk [vmem:[#allocation2 + $0x20] sm:$0xf] %vm501_vm7, %v470_v16  ;;  %v207_v16 = vld [vmem:[%s2550_s24 + $0x24] sm:$0xf]  ;;  %v451_v17 = vrot.slane %v449_v7, 5 }
  0x92   : > { %v454_v25 = vpop.permute.xlu0 %453  ;;  %463 = vrot.lane.b32.xlu1 %v332_v11, %s2484_s26  ;;  %v1709_v11 = vsel %vm2552_vm2, %v2316_v58, %v1708_v29  ;;  %224 = vst.msk [vmem:[#allocation2 + $0x18] sm:$0xf] %vm217_vm6, %v207_v16  ;;  %v356_v13 = vsel %vm2574_vm5, %v351_v5, %v355_v6  ;;  %v524_v29 = vld [vmem:[%s2550_s24 + $0x18] sm:$0xe]  ;;  %v541_v58 = vld [vmem:[%s2550_s24 + $0x5c] sm:$0x1] }
  0x93   : > { %502 = vst.msk [vmem:[#allocation2] sm:$0xf] %vm501_vm7, %v454_v25  ;;  %v215_v25 = vld [vmem:[%s2550_s24 + $0x54] sm:$0xf]  ;;  %v452_v30 = vsel %vm2574_vm5, %v447_v19, %v451_v17  ;;  %v2165_v39 = vrot.slane %v524_v29, 9 }
  0x94   : > { %461 = vrot.lane.b32.xlu0 %v322_v20, %s2484_s26  ;;  %v472_v37 = vpop.permute.xlu1 %471  ;;  %674 = vst.msk [vmem:[#allocation2] sm:$0xf] %vm673_vm8, %v626_v62  ;;  %v432_v62 = vrot.slane %v430_v45, 4  ;;  %v585_v20 = vrot.slane %v2922_v9, 5  ;;  %v2178_v16 = vld [vmem:[%s2550_s24 + $0x28] sm:$0xf] }
  0x95   : > { %511 = vst.msk [vmem:[#allocation2 + $0x24] sm:$0xf] %vm501_vm7, %v472_v37  ;;  %v528_v37 = vld [vmem:[%s2550_s24 + $0x28] sm:$0xf] }
  0x96   : > { %v456_v48 = vpop.permute.xlu0 %455  ;;  %479 = vrot.lane.b32.xlu1 %v428_v26, %s2484_s26  ;;  %v436_v14 = vor.u32 %v435_v2, %v432_v62  ;;  %v346_v26 = vsel %vm2574_vm5, %v341_v12, %v2877_v31  ;;  %232 = vst.msk [vmem:[#allocation2 + $0x38] sm:$0xf] %vm217_vm6, %v215_v25  ;;  %v587_v33 = vrot.slane %v585_v20, 4  ;;  %v613_v31 = vrot.slane %v537_v24, 5  ;;  %v539_v62 = vld [vmem:[%s2550_s24 + $0x54] sm:$0xe] }
  0x97   : > { %503 = vst.msk [vmem:[#allocation2 + $0x4] sm:$0xf] %vm501_vm7, %v456_v48  ;;  %v592_v45 = vrot.slane %v528_v37, 5  ;;  %v529_v48 = vld [vmem:[%s2550_s24 + $0x2c] sm:$0x1]  ;;  %v586_v49 = vsel %vm2552_vm2, %v2165_v39, %v585_v20  ;;  %v2170_v6 = vrot.slane %v539_v62, 9 }
  0x98   : > { %477 = vrot.lane.b32.xlu0 %v418_v38, %s2484_s26  ;;  %v460_v56 = vpop.permute.xlu1 %459  ;;  %675 = vst.msk [vmem:[#allocation2 + $0x4] sm:$0xf] %vm673_vm8, %v2837_v59  ;;  %v1902_v59 = vsel %vm1900_vm9, %v2433_v55, 0  ;;  %v437_v27 = vrot.slane %v436_v14, 4  ;;  %v589_v42 = vsel %vm2552_vm2, %v587_v33, %v588_v34  ;;  %v615_v43 = vrot.slane %v613_v31, 4 }
  0x99   : > { %505 = vst.msk [vmem:[#allocation2 + $0xc] sm:$0xf] %vm501_vm7, %v460_v56  ;;  %2354 = vmatpush3.bf16.msra.mxu0 %v1902_v59  ;;  %2378 = vmatpush3.bf16.msra.mxu1 %v1902_v59  ;;  %v594_v54 = vrot.slane %v592_v45, 4  ;;  %v595_v55 = vrot.slane %v529_v48, 5  ;;  %v614_v60 = vsel %vm2552_vm2, %v2169_v50, %v613_v31  ;;  %v2177_v20 = vld [vmem:[%s2550_s24 + $0x24] sm:$0xf] }
  0x9a   : > { %v458_v1 = vpop.permute.xlu0 %457  ;;  %1733 = vrot.lane.b32.xlu1 %v1684_v46, %s2490_s5  ;;  %2355 = vmatprep.subr.bf16.mxu0 %v2435_v61  ;;  %v442_v38 = vsel %vm2574_vm5, %v437_v27, %v2898_v53  ;;  %v540_v46 = vld [vmem:[%s2550_s24 + $0x58] sm:$0xf]  ;;  %v617_v53 = vsel %vm2552_vm2, %v615_v43, %v616_v44  ;;  %v960_v34 = vshrl.u32 %v2207_v21, 16  ;;  %v963_v31 = vshll.u32 %v2207_v21, 16  ;;  %v2180_v43 = vld [vmem:[%s2550_s24 + $0x34] sm:$0xf] }
  0x9b   : > { %504 = vst.msk [vmem:[#allocation2 + $0x8] sm:$0xf] %vm501_vm7, %v458_v1  ;;  %2376 = vmatprep.subr.bf16.mxu1 %v2435_v61  ;;  %v620_v56 = vrot.slane %v540_v46, 5  ;;  %v596_v2 = vsel %vm2552_vm2, %v594_v54, %v595_v55  ;;  %v2186_v27 = vld [vmem:[%s2550_s24 + $0x58] sm:$0xf] }
  0x9c   : > { %1731 = vrot.lane.b32.xlu0 %v1681_v57, %s2490_s5  ;;  %v476_v8 = vpop.permute.xlu1 %475  ;;  %v2209_v44 = vld [vmem:[%s2550_s24 + $0x5c] sm:$0x1]  ;;  %v965_v50 = vrot.slane %v963_v31, 5  ;;  %v2200_v62 = vld [vmem:[%s2550_s24 + $0x38] sm:$0x1] }
  0x9d   : > { %513 = vst.msk [vmem:[#allocation2 + $0x2c] sm:$0xf] %vm501_vm7, %v476_v8  ;;  %2356 = vmatpush3.bf16.msra.mxu0 %v2435_v61  ;;  %2379 = vmatpush3.bf16.msra.mxu1 %v2435_v61  ;;  %v2166_v61 = vrot.slane %v527_v52, 9  ;;  %v622_v1 = vrot.slane %v620_v56, 4  ;;  %v2196_v8 = vld [vmem:[%s2550_s24 + $0x28] sm:$0xf] }
  0x9e   : > { %v474_v18 = vpop.permute.xlu0 %473  ;;  %1749 = vrot.lane.b32.xlu1 %v1712_v4, %s2490_s5  ;;  %2357 = vmatprep.subr.bf16.mxu0 %v2436_v10  ;;  %v623_v4 = vrot.slane %v541_v58, 5  ;;  %v873_v14 = vshll.u32 %v2196_v8, 16  ;;  %v877_v15 = vshrl.u32 %v2196_v8, 16  ;;  %v2179_v52 = vld [vmem:[%s2550_s24 + $0x30] sm:$0xf] }
  0x9f   : > { %512 = vst.msk [vmem:[#allocation2 + $0x28] sm:$0xf] %vm501_vm7, %v474_v18  ;;  %2377 = vmatprep.subr.bf16.mxu1 %v2436_v10  ;;  %v593_v5 = vsel %vm2552_vm2, %v2166_v61, %v592_v45  ;;  %v2208_v18 = vld [vmem:[%s2550_s24 + $0x58] sm:$0xf]  ;;  %v979_v61 = vshll.u32 %v2209_v44, 16 }
  0xa0   : > { %1747 = vrot.lane.b32.xlu0 %v1709_v11, %s2490_s5  ;;  %v644_v22 = vpop.permute.xlu1 %643  ;;  %v624_v7 = vsel %vm2552_vm2, %v622_v1, %v623_v4  ;;  %v2195_v11 = vld [vmem:[%s2550_s24 + $0x24] sm:$0xf]  ;;  %v3013_v23 = vrot.slane %v873_v14, 5  ;;  %v879_v24 = vrot.slane %v877_v15, 4  ;;  %v969_v25 = vshll.u32 %v2208_v18, 16 }
  0xa1   : > { %683 = vst.msk [vmem:[#allocation2 + $0x24] sm:$0xf] %vm673_vm8, %v644_v22  ;;  %2358 = vmatpush3.bf16.msra.mxu0 %v2436_v10  ;;  %2380 = vmatpush3.bf16.msra.mxu1 %v2436_v10  ;;  %v621_v10 = vsel %vm2552_vm2, %v2170_v6, %v620_v56  ;;  %v864_v19 = vshrl.u32 %v2195_v11, 16  ;;  %v867_v17 = vshll.u32 %v2195_v11, 16  ;;  %v981_v15 = vrot.slane %v979_v61, 5 }
  0xa2   : > { %v642_v28 = vpop.permute.xlu0 %641  ;;  %467 = vrot.lane.b32.xlu1 %v356_v13, %s2484_s26 }
  0xa3   : > { %682 = vst.msk [vmem:[#allocation2 + $0x20] sm:$0xf] %vm673_vm8, %v642_v28  ;;  %v2197_v28 = vld [vmem:[%s2550_s24 + $0x2c] sm:$0x1]  ;;  %v869_v33 = vrot.slane %v867_v17, 5 }
  0xa4   : > { %465 = vrot.lane.b32.xlu0 %v346_v26, %s2484_s26  ;;  %v632_v35 = vpop.permute.xlu1 %631  ;;  %v973_v26 = vshrl.u32 %v2208_v18, 16  ;;  %v883_v39 = vshll.u32 %v2197_v28, 16 }
  0xa5   : > { %677 = vst.msk [vmem:[#allocation2 + $0xc] sm:$0xf] %vm673_vm8, %v632_v35  ;;  %v2199_v35 = vld [vmem:[%s2550_s24 + $0x34] sm:$0xf] }
  0xa6   : > { %v630_v40 = vpop.permute.xlu0 %629  ;;  %483 = vrot.lane.b32.xlu1 %v452_v30, %s2484_s26  ;;  %v866_v30 = vrot.slane %v864_v19, 4  ;;  %v975_v41 = vrot.slane %v973_v26, 4  ;;  %v897_v45 = vshll.u32 %v2199_v35, 16  ;;  %v885_v58 = vrot.slane %v883_v39, 5 }
  0xa7   : > { %676 = vst.msk [vmem:[#allocation2 + $0x8] sm:$0xf] %vm673_vm8, %v630_v40  ;;  %v3024_v40 = vrot.slane %v969_v25, 5 }
  0xa8   : > { %481 = vrot.lane.b32.xlu0 %v442_v38, %s2484_s26  ;;  %v648_v47 = vpop.permute.xlu1 %647  ;;  %v880_v38 = vor.u32 %v879_v24, %v3013_v23  ;;  %v870_v46 = vor.u32 %v869_v33, %v866_v30 }
  0xa9   : > { %685 = vst.msk [vmem:[#allocation2 + $0x2c] sm:$0xf] %vm673_vm8, %v648_v47  ;;  %v901_v47 = vshrl.u32 %v2199_v35, 16  ;;  %v2220_v35 = vld [vmem:[%s2550_s24 + $0x28] sm:$0xf] }
  0xaa   : > { %v646_v51 = vpop.permute.xlu0 %645  ;;  %635 = vrot.lane.b32.xlu1 %v589_v42, %s2483_s25  ;;  %v2198_v42 = vld [vmem:[%s2550_s24 + $0x30] sm:$0xf]  ;;  %v871_v6 = vrot.slane %v870_v46, 4  ;;  %v1136_v44 = vrot.slane %v2220_v35, 5 }
  0xab   : > { %684 = vst.msk [vmem:[#allocation2 + $0x28] sm:$0xf] %vm673_vm8, %v646_v51  ;;  %v2211_v51 = vld [vmem:[%s2550_s24 + $0x64] sm:$0xf]  ;;  %v888_v54 = vshrl.u32 %v2198_v42, 16  ;;  %v891_v55 = vshll.u32 %v2198_v42, 16 }
  0xac   : > { %633 = vrot.lane.b32.xlu0 %v586_v49, %s2483_s25  ;;  %v729_v57 = vpop.permute.xlu1 %728  ;;  %v962_v49 = vrot.slane %v960_v34, 4  ;;  %v903_v1 = vrot.slane %v901_v47, 4  ;;  %v993_v4 = vshll.u32 %v2211_v51, 16  ;;  %v876_v21 = vsel %vm2574_vm5, %v871_v6, %v3013_v23  ;;  %v2221_v47 = vld [vmem:[%s2550_s24 + $0x2c] sm:$0x1] }
  0xad   : > { %776 = vst.msk [vmem:[#allocation2 + $0x4] sm:$0xf] %vm774_vm10, %v729_v57  ;;  %v881_v57 = vrot.slane %v880_v38, 4  ;;  %v890_v8 = vrot.slane %v888_v54, 4  ;;  %v2235_v6 = vld [vmem:[%s2550_s24 + $0x64] sm:$0xf] }
  0xae   : > { %v727_v63 = vpop.permute.xlu0 %726  ;;  %651 = vrot.lane.b32.xlu1 %v617_v53, %s2483_s25  ;;  %v2188_v53 = vld [vmem:[%s2550_s24 + $0x64] sm:$0xf]  ;;  %v3050_v19 = vrot.slane %v993_v4, 5 }
  0xaf   : > { %775 = vst.msk [vmem:[#allocation2] sm:$0xf] %vm774_vm10, %v727_v63  ;;  %v2210_v63 = vld [vmem:[%s2550_s24 + $0x60] sm:$0xf]  ;;  %v886_v14 = vsel %vm2574_vm5, %v881_v57, %v885_v58  ;;  %v2223_v57 = vld [vmem:[%s2550_s24 + $0x34] sm:$0xf] }
  0xb0   : > { %649 = vrot.lane.b32.xlu0 %v614_v60, %s2483_s25  ;;  %v745_v59 = vpop.permute.xlu1 %744  ;;  %v976_v60 = vor.u32 %v975_v41, %v3024_v40  ;;  %v987_v11 = vshll.u32 %v2210_v63, 16  ;;  %v1143_v4 = vrot.slane %v2223_v57, 5 }
  0xb1   : > { %784 = vst.msk [vmem:[#allocation2 + $0x24] sm:$0xf] %vm774_vm10, %v745_v59  ;;  %v997_v59 = vshrl.u32 %v2211_v51, 16 }
  0xb2   : > { %v743_v3 = vpop.permute.xlu0 %742  ;;  %639 = vrot.lane.b32.xlu1 %v596_v2, %s2483_s25  ;;  %v3040_v2 = vrot.slane %v897_v45, 5  ;;  %v977_v18 = vrot.slane %v976_v60, 4 }
  0xb3   : > { %783 = vst.msk [vmem:[#allocation2 + $0x20] sm:$0xf] %vm774_vm10, %v743_v3  ;;  %v966_v3 = vor.u32 %v965_v50, %v962_v49  ;;  %v999_v17 = vrot.slane %v997_v59, 4  ;;  %v2219_v50 = vld [vmem:[%s2550_s24 + $0x24] sm:$0xe] }
  0xb4   : > { %637 = vrot.lane.b32.xlu0 %v593_v5, %s2483_s25  ;;  %v733_v9 = vpop.permute.xlu1 %732  ;;  %v982_v30 = vsel %vm2574_vm5, %v977_v18, %v981_v15  ;;  %v2239_v60 = vrot.slane %v2219_v50, 9 }
  0xb5   : > { %778 = vst.msk [vmem:[#allocation2 + $0xc] sm:$0xf] %vm774_vm10, %v733_v9  ;;  %v893_v9 = vrot.slane %v891_v55, 5  ;;  %v967_v24 = vrot.slane %v966_v3, 4  ;;  %v1000_v23 = vor.u32 %v999_v17, %v3050_v19  ;;  %v2234_v17 = vld [vmem:[%s2550_s24 + $0x60] sm:$0xe] }
  0xb6   : > { %v731_v12 = vpop.permute.xlu0 %730  ;;  %655 = vrot.lane.b32.xlu1 %v624_v7, %s2483_s25  ;;  %v2187_v7 = vld [vmem:[%s2550_s24 + $0x60] sm:$0xf]  ;;  %v1137_v3 = vsel %vm2552_vm2, %v2239_v60, %v1136_v44 }
  0xb7   : > { %777 = vst.msk [vmem:[#allocation2 + $0x8] sm:$0xf] %vm774_vm10, %v731_v12  ;;  %v894_v25 = vor.u32 %v893_v9, %v890_v8  ;;  %v1001_v42 = vrot.slane %v1000_v23, 4  ;;  %v2222_v9 = vld [vmem:[%s2550_s24 + $0x30] sm:$0xe] }
  0xb8   : > { %653 = vrot.lane.b32.xlu0 %v621_v10, %s2483_s25  ;;  %v749_v13 = vpop.permute.xlu1 %748  ;;  %v984_v10 = vshrl.u32 %v2210_v63, 16  ;;  %v2231_v63 = vld [vmem:[%s2550_s24 + $0x54] sm:$0xe]  ;;  %v2269_v23 = vld [vmem:[%s2550_s24 + $0x30] sm:$0xf]  ;;  %s2159_s25 = sshll.u32 %s192_s22, 3 }
  0xb9   : > { %786 = vst.msk [vmem:[#allocation2 + $0x2c] sm:$0xf] %vm774_vm10, %v749_v13  ;;  %v904_v13 = vor.u32 %v903_v1, %v3040_v2 }
  0xba   : > { %v747_v22 = vpop.permute.xlu0 %746  ;;  %736 = vrot.lane.b32.xlu1 %v2178_v16, %s2485_s27  ;;  %v907_v16 = vshll.u32 %v2200_v62, 16  ;;  %v986_v26 = vrot.slane %v984_v10, 4 }
  0xbb   : > { %785 = vst.msk [vmem:[#allocation2 + $0x28] sm:$0xf] %vm774_vm10, %v747_v22  ;;  %v2212_v22 = vld [vmem:[%s2550_s24 + $0x68] sm:$0x1]  ;;  %v905_v33 = vrot.slane %v904_v13, 4  ;;  %v2240_v13 = vrot.slane %v2222_v9, 9 }
  0xbc   : > { %734 = vrot.lane.b32.xlu0 %v2177_v20, %s2485_s27  ;;  %v1010_v29 = vpop.permute.xlu1 %1009  ;;  %v1003_v34 = vshll.u32 %v2212_v22, 16  ;;  %v2253_v9 = vld [vmem:[%s2550_s24 + $0x3c] sm:$0xf] }
  0xbd   : > { %1057 = vst.msk [vmem:[#allocation2 + $0x4] sm:$0xf] %vm1055_vm11, %v1010_v29  ;;  %v909_v29 = vrot.slane %v907_v16, 5  ;;  %v2236_v16 = vld [vmem:[%s2550_s24 + $0x68] sm:$0x1] }
  0xbe   : > { %v1008_v37 = vpop.permute.xlu0 %1007  ;;  %752 = vrot.lane.b32.xlu1 %v2186_v27, %s2485_s27  ;;  %v989_v27 = vrot.slane %v987_v11, 5  ;;  %v1145_v11 = vrot.slane %v1143_v4, 4  ;;  %v1174_v22 = vrot.slane %v2236_v16, 5 }
  0xbf   : > { %1056 = vst.msk [vmem:[#allocation2] sm:$0xf] %vm1055_vm11, %v1008_v37  ;;  %v895_v37 = vrot.slane %v894_v25, 4  ;;  %v910_v41 = vsel %vm2574_vm5, %v905_v33, %v909_v29  ;;  %v1144_v25 = vsel %vm2552_vm2, %v2240_v13, %v1143_v4  ;;  %v2270_v29 = vld [vmem:[%s2550_s24 + $0x34] sm:$0xf] }
  0xc0   : > { %750 = vrot.lane.b32.xlu0 %v2185_v36, %s2485_s27  ;;  %v1026_v48 = vpop.permute.xlu1 %1025  ;;  %v972_v36 = vsel %vm2574_vm5, %v967_v24, %v3024_v40  ;;  %v990_v38 = vor.u32 %v989_v27, %v986_v26  ;;  %v2232_v40 = vld [vmem:[%s2550_s24 + $0x58] sm:$0xf]  ;;  %v2244_v26 = vrot.slane %v2234_v17, 9  ;;  %v1428_v35 = vshrl.u32 %v2270_v29, 16  ;;  %v2274_v17 = vld [vmem:[%s2550_s24 + $0x44] sm:$0x1] }
  0xc1   : > { %1065 = vst.msk [vmem:[#allocation2 + $0x24] sm:$0xf] %vm1055_vm11, %v1026_v48  ;;  %v900_v48 = vsel %vm2574_vm5, %v895_v37, %v3040_v2  ;;  %v1164_v54 = vrot.slane %v2232_v40, 5  ;;  %v2282_v37 = vld [vmem:[%s2550_s24 + $0x64] sm:$0xf] }
  0xc2   : > { %v1024_v56 = vpop.permute.xlu0 %1023  ;;  %740 = vrot.lane.b32.xlu1 %v2180_v43, %s2485_s27  ;;  %v1005_v43 = vrot.slane %v1003_v34, 5  ;;  %v991_v46 = vrot.slane %v990_v38, 4  ;;  %v1520_v40 = vshll.u32 %v2282_v37, 16 }
  0xc3   : > { %1064 = vst.msk [vmem:[#allocation2 + $0x20] sm:$0xf] %vm1055_vm11, %v1024_v56  ;;  %v2233_v56 = vld [vmem:[%s2550_s24 + $0x5c] sm:$0x1]  ;;  %v1166_v2 = vrot.slane %v1164_v54, 4 }
  0xc4   : > { %738 = vrot.lane.b32.xlu0 %v2179_v52, %s2485_s27  ;;  %v1014_v5 = vpop.permute.xlu1 %1013  ;;  %v1006_v51 = vsel %vm2574_vm5, %v1001_v42, %v1005_v43  ;;  %v1138_v52 = vrot.slane %v1136_v44, 4  ;;  %v996_v58 = vsel %vm2574_vm5, %v991_v46, %v3050_v19  ;;  %v1167_v1 = vrot.slane %v2233_v56, 5  ;;  %v2251_v42 = vld [vmem:[%s2550_s24 + $0x30] sm:$0xf]  ;;  %v2281_v43 = vld [vmem:[%s2550_s24 + $0x60] sm:$0xf] }
  0xc5   : > { %1059 = vst.msk [vmem:[#allocation2 + $0xc] sm:$0xf] %vm1055_vm11, %v1014_v5  ;;  %v2224_v5 = vld [vmem:[%s2550_s24 + $0x38] sm:$0x1]  ;;  %v2260_v46 = vld [vmem:[%s2550_s24 + $0x64] sm:$0xf] }
  0xc6   : > { %v1012_v12 = vpop.permute.xlu0 %1011  ;;  %756 = vrot.lane.b32.xlu1 %v2188_v53, %s2485_s27  ;;  %v1139_v53 = vrot.slane %v2221_v47, 5  ;;  %v1168_v10 = vsel %vm2552_vm2, %v1166_v2, %v1167_v1  ;;  %v1430_v47 = vrot.slane %v1428_v35, 4  ;;  %v2259_v56 = vld [vmem:[%s2550_s24 + $0x60] sm:$0xf]  ;;  %v2283_v1 = vld [vmem:[%s2550_s24 + $0x68] sm:$0x1] }
  0xc7   : > { %1058 = vst.msk [vmem:[#allocation2 + $0x8] sm:$0xf] %vm1055_vm11, %v1012_v12  ;;  %v1146_v12 = vrot.slane %v2224_v5, 5  ;;  %v2254_v2 = vld [vmem:[%s2550_s24 + $0x40] sm:$0xf]  ;;  %v1530_v13 = vshll.u32 %v2283_v1, 16 }
  0xc8   : > { %754 = vrot.lane.b32.xlu0 %v2187_v7, %s2485_s27  ;;  %v1030_v20 = vpop.permute.xlu1 %1029  ;;  %v1140_v62 = vsel %vm2552_vm2, %v1138_v52, %v1139_v53  ;;  %v2243_v7 = vrot.slane %v2231_v63, 9  ;;  %v1511_v53 = vshrl.u32 %v2281_v43, 16  ;;  %s3339_s27 = scalar_lea.vmem %s3405_s3, %s2159_s25 }
  0xc9   : > { %1067 = vst.msk [vmem:[#allocation2 + $0x2c] sm:$0xf] %vm1055_vm11, %v1030_v20  ;;  %v1147_v20 = vsel %vm2552_vm2, %v1145_v11, %v1146_v12  ;;  %v1532_v35 = vrot.slane %v1530_v13, 5 }
  0xca   : > { %v1028_v28 = vpop.permute.xlu0 %1027  ;;  %1017 = vrot.lane.b32.xlu1 %v886_v14, %s2486_s28  ;;  %v1171_v14 = vrot.slane %v2235_v6, 5  ;;  %v1165_v18 = vsel %vm2552_vm2, %v2243_v7, %v1164_v54  ;;  %v1514_v54 = vshll.u32 %v2281_v43, 16 }
  0xcb   : > { %1066 = vst.msk [vmem:[#allocation2 + $0x28] sm:$0xf] %vm1055_vm11, %v1028_v28 }
  0xcc   : > { %1015 = vrot.lane.b32.xlu0 %v876_v21, %s2486_s28  ;;  %v1179_v31 = vpop.permute.xlu1 %1178  ;;  %v1173_v21 = vrot.slane %v1171_v14, 4  ;;  %v1172_v33 = vsel %vm2552_vm2, %v2244_v26, %v1171_v14  ;;  %v1516_v7 = vrot.slane %v1514_v54, 5 }
  0xcd   : > { %1226 = vst.msk [vmem:[#allocation2 + $0x4] sm:$0xf] %vm1224_vm12, %v1179_v31  ;;  %v1424_v31 = vshll.u32 %v2270_v29, 16 }
  0xce   : > { %v1177_v39 = vpop.permute.xlu0 %1176  ;;  %1033 = vrot.lane.b32.xlu1 %v982_v30, %s2486_s28  ;;  %v1175_v28 = vsel %vm2552_vm2, %v1173_v21, %v1174_v22 }
  0xcf   : > { %1225 = vst.msk [vmem:[#allocation2] sm:$0xf] %vm1224_vm12, %v1177_v39  ;;  %v1415_v39 = vshrl.u32 %v2269_v23, 16 }
  0xd0   : > { %1031 = vrot.lane.b32.xlu0 %v972_v36, %s2486_s28  ;;  %v1195_v45 = vpop.permute.xlu1 %1194  ;;  %v2252_v36 = vld [vmem:[%s2550_s24 + $0x34] sm:$0xf] }
  0xd1   : > { %1234 = vst.msk [vmem:[#allocation2 + $0x24] sm:$0xf] %vm1224_vm12, %v1195_v45  ;;  %v3141_v45 = vrot.slane %v1424_v31, 5 }
  0xd2   : > { %v1193_v49 = vpop.permute.xlu0 %1192  ;;  %1021 = vrot.lane.b32.xlu1 %v910_v41, %s2486_s28  ;;  %v1418_v41 = vshll.u32 %v2269_v23, 16 }
  0xd3   : > { %1233 = vst.msk [vmem:[#allocation2 + $0x20] sm:$0xf] %vm1224_vm12, %v1193_v49  ;;  %v2271_v49 = vld [vmem:[%s2550_s24 + $0x38] sm:$0x1] }
  0xd4   : > { %1019 = vrot.lane.b32.xlu0 %v900_v48, %s2486_s28  ;;  %v1183_v55 = vpop.permute.xlu1 %1182  ;;  %v1524_v48 = vshrl.u32 %v2282_v37, 16  ;;  %v1420_v52 = vrot.slane %v1418_v41, 5  ;;  %v1434_v60 = vshll.u32 %v2271_v49, 16 }
  0xd5   : > { %1228 = vst.msk [vmem:[#allocation2 + $0xc] sm:$0xf] %vm1224_vm12, %v1183_v55  ;;  %v2273_v55 = vld [vmem:[%s2550_s24 + $0x40] sm:$0xf] }
  0xd6   : > { %v1181_v61 = vpop.permute.xlu0 %1180  ;;  %1037 = vrot.lane.b32.xlu1 %v1006_v51, %s2486_s28  ;;  %v1417_v51 = vrot.slane %v1415_v39, 4  ;;  %v1526_v63 = vrot.slane %v1524_v48, 4  ;;  %v1448_v4 = vshll.u32 %v2273_v55, 16  ;;  %v1436_v16 = vrot.slane %v1434_v60, 5 }
  0xd7   : > { %1227 = vst.msk [vmem:[#allocation2 + $0x8] sm:$0xf] %vm1224_vm12, %v1181_v61  ;;  %v3152_v61 = vrot.slane %v1520_v40, 5 }
  0xd8   : > { %1035 = vrot.lane.b32.xlu0 %v996_v58, %s2486_s28  ;;  %v1199_v59 = vpop.permute.xlu1 %1198  ;;  %v1431_v58 = vor.u32 %v1430_v47, %v3141_v45  ;;  %v1421_v6 = vor.u32 %v1420_v52, %v1417_v51 }
  0xd9   : > { %1236 = vst.msk [vmem:[#allocation2 + $0x2c] sm:$0xf] %vm1224_vm12, %v1199_v59  ;;  %v1452_v59 = vshrl.u32 %v2273_v55, 16  ;;  %v2294_v55 = vld [vmem:[%s2550_s24 + $0x34] sm:$0xf] }
  0xda   : > { %v1197_v8 = vpop.permute.xlu0 %1196  ;;  %1186 = vrot.lane.b32.xlu1 %v1140_v62, %s2487_s29  ;;  %v2272_v62 = vld [vmem:[%s2550_s24 + $0x3c] sm:$0xf]  ;;  %v1422_v26 = vrot.slane %v1421_v6, 4  ;;  %v1687_v1 = vrot.slane %v2294_v55, 5 }
  0xdb   : > { %1235 = vst.msk [vmem:[#allocation2 + $0x28] sm:$0xf] %vm1224_vm12, %v1197_v8  ;;  %v2285_v8 = vld [vmem:[%s2550_s24 + $0x70] sm:$0xf]  ;;  %v1439_v11 = vshrl.u32 %v2272_v62, 16  ;;  %v1442_v12 = vshll.u32 %v2272_v62, 16 }
  0xdc   : > { %1184 = vrot.lane.b32.xlu0 %v1137_v3, %s2487_s29  ;;  %v1280_v15 = vpop.permute.xlu1 %1279  ;;  %v1513_v3 = vrot.slane %v1511_v53, 4  ;;  %v1454_v21 = vrot.slane %v1452_v59, 4  ;;  %v1544_v22 = vshll.u32 %v2285_v8, 16  ;;  %v1427_v43 = vsel %vm2574_vm5, %v1422_v26, %v3141_v45  ;;  %v2295_v59 = vld [vmem:[%s2550_s24 + $0x38] sm:$0x1] }
  0xdd   : > { %1327 = vst.msk [vmem:[#allocation2 + $0x4] sm:$0xf] %vm1325_vm13, %v1280_v15  ;;  %v1432_v15 = vrot.slane %v1431_v58, 4  ;;  %v1441_v29 = vrot.slane %v1439_v11, 4  ;;  %v2309_v26 = vld [vmem:[%s2550_s24 + $0x70] sm:$0xf] }
  0xde   : > { %v1278_v19 = vpop.permute.xlu0 %1277  ;;  %1202 = vrot.lane.b32.xlu1 %v1168_v10, %s2487_s29  ;;  %v2262_v10 = vld [vmem:[%s2550_s24 + $0x70] sm:$0xf]  ;;  %v3178_v39 = vrot.slane %v1544_v22, 5 }
  0xdf   : > { %1326 = vst.msk [vmem:[#allocation2] sm:$0xf] %vm1325_vm13, %v1278_v19  ;;  %v2284_v19 = vld [vmem:[%s2550_s24 + $0x6c] sm:$0xf]  ;;  %v1437_v31 = vsel %vm2574_vm5, %v1432_v15, %v1436_v16  ;;  %v2297_v15 = vld [vmem:[%s2550_s24 + $0x40] sm:$0xf] }
  0xe0   : > { %1200 = vrot.lane.b32.xlu0 %v1165_v18, %s2487_s29  ;;  %v1296_v24 = vpop.permute.xlu1 %1295  ;;  %v1527_v18 = vor.u32 %v1526_v63, %v3152_v61  ;;  %v1538_v23 = vshll.u32 %v2284_v19, 16 }
  0xe1   : > { %1335 = vst.msk [vmem:[#allocation2 + $0x24] sm:$0xf] %vm1325_vm13, %v1296_v24  ;;  %v1548_v24 = vshrl.u32 %v2285_v8, 16 }
  0xe2   : > { %v1294_v27 = vpop.permute.xlu0 %1293  ;;  %1190 = vrot.lane.b32.xlu1 %v1147_v20, %s2487_s29  ;;  %v3168_v20 = vrot.slane %v1448_v4, 5  ;;  %v1528_v37 = vrot.slane %v1527_v18, 4 }
  0xe3   : > { %1334 = vst.msk [vmem:[#allocation2 + $0x20] sm:$0xf] %vm1325_vm13, %v1294_v27  ;;  %v1517_v27 = vor.u32 %v1516_v7, %v1513_v3  ;;  %v1550_v41 = vrot.slane %v1548_v24, 4  ;;  %v2293_v7 = vld [vmem:[%s2550_s24 + $0x30] sm:$0xe]  ;;  %v1694_v24 = vrot.slane %v2297_v15, 5 }
  0xe4   : > { %1188 = vrot.lane.b32.xlu0 %v1144_v25, %s2487_s29  ;;  %v1284_v30 = vpop.permute.xlu1 %1283  ;;  %v1533_v51 = vsel %vm2574_vm5, %v1528_v37, %v1532_v35  ;;  %v2313_v18 = vrot.slane %v2293_v7, 9  ;;  %v1722_v35 = vrot.slane %v2309_v26, 5  ;;  %v2310_v37 = vld [vmem:[%s2550_s24 + $0x74] sm:$0x1] }
  0xe5   : > { %1329 = vst.msk [vmem:[#allocation2 + $0xc] sm:$0xf] %vm1325_vm13, %v1284_v30  ;;  %v1444_v30 = vrot.slane %v1442_v12, 5  ;;  %v1518_v47 = vrot.slane %v1517_v27, 4  ;;  %v1551_v45 = vor.u32 %v1550_v41, %v3178_v39 }
  0xe6   : > { %v1282_v34 = vpop.permute.xlu0 %1281  ;;  %1206 = vrot.lane.b32.xlu1 %v1175_v28, %s2487_s29  ;;  %v2261_v28 = vld [vmem:[%s2550_s24 + $0x6c] sm:$0xf]  ;;  %v1688_v27 = vsel %vm2552_vm2, %v2313_v18, %v1687_v1 }
  0xe7   : > { %1328 = vst.msk [vmem:[#allocation2 + $0x8] sm:$0xf] %vm1325_vm13, %v1282_v34  ;;  %v1445_v40 = vor.u32 %v1444_v30, %v1441_v29  ;;  %v1552_v62 = vrot.slane %v1551_v45, 4 }
  0xe8   : > { %1204 = vrot.lane.b32.xlu0 %v1172_v33, %s2487_s29  ;;  %v1300_v38 = vpop.permute.xlu1 %1299  ;;  %v1535_v33 = vshrl.u32 %v2284_v19, 16 }
  0xe9   : > { %1337 = vst.msk [vmem:[#allocation2 + $0x2c] sm:$0xf] %vm1325_vm13, %v1300_v38  ;;  %v1455_v38 = vor.u32 %v1454_v21, %v3168_v20 }
  0xea   : > { %v1298_v44 = vpop.permute.xlu0 %1297  ;;  %1287 = vrot.lane.b32.xlu1 %v2252_v36, %s2488_s30  ;;  %v1458_v36 = vshll.u32 %v2274_v17, 16  ;;  %v1537_v48 = vrot.slane %v1535_v33, 4  ;;  %v2305_v17 = vld [vmem:[%s2550_s24 + $0x60] sm:$0xe]  ;;  %v2296_v33 = vld [vmem:[%s2550_s24 + $0x3c] sm:$0xe] }
  0xeb   : > { %1336 = vst.msk [vmem:[#allocation2 + $0x28] sm:$0xf] %vm1325_vm13, %v1298_v44  ;;  %v2286_v44 = vld [vmem:[%s2550_s24 + $0x74] sm:$0x1]  ;;  %v1456_v52 = vrot.slane %v1455_v38, 4 }
  0xec   : > { %1285 = vrot.lane.b32.xlu0 %v2251_v42, %s2488_s30  ;;  %v1561_v50 = vpop.permute.xlu1 %1560  ;;  %v1554_v53 = vshll.u32 %v2286_v44, 16  ;;  %v1724_v44 = vrot.slane %v1722_v35, 4 }
  0xed   : > { %1608 = vst.msk [vmem:[#allocation2 + $0x4] sm:$0xf] %vm1606_vm14, %v1561_v50  ;;  %v1460_v50 = vrot.slane %v1458_v36, 5 }
  0xee   : > { %v1559_v57 = vpop.permute.xlu0 %1558  ;;  %1303 = vrot.lane.b32.xlu1 %v2260_v46, %s2488_s30  ;;  %v1540_v46 = vrot.slane %v1538_v23, 5 }
  0xef   : > { %1607 = vst.msk [vmem:[#allocation2] sm:$0xf] %vm1606_vm14, %v1559_v57  ;;  %v1446_v57 = vrot.slane %v1445_v40, 4  ;;  %v1461_v63 = vsel %vm2574_vm5, %v1456_v52, %v1460_v50 }
  0xf0   : > { %1301 = vrot.lane.b32.xlu0 %v2259_v56, %s2488_s30  ;;  %v1577_v5 = vpop.permute.xlu1 %1576  ;;  %v1523_v56 = vsel %vm2574_vm5, %v1518_v47, %v3152_v61  ;;  %v1541_v58 = vor.u32 %v1540_v46, %v1537_v48  ;;  %v2306_v61 = vld [vmem:[%s2550_s24 + $0x64] sm:$0xf]  ;;  %v1725_v47 = vrot.slane %v2310_v37, 5 }
  0xf1   : > { %1616 = vst.msk [vmem:[#allocation2 + $0x24] sm:$0xf] %vm1606_vm14, %v1577_v5  ;;  %v1451_v5 = vsel %vm2574_vm5, %v1446_v57, %v3168_v20  ;;  %v1715_v11 = vrot.slane %v2306_v61, 5 }
  0xf2   : > { %v1575_v14 = vpop.permute.xlu0 %1574  ;;  %1291 = vrot.lane.b32.xlu1 %v2254_v2, %s2488_s30  ;;  %v1556_v2 = vrot.slane %v1554_v53, 5  ;;  %v1542_v6 = vrot.slane %v1541_v58, 4  ;;  %v1726_v50 = vsel %vm2552_vm2, %v1724_v44, %v1725_v47 }
  0xf3   : > { %1615 = vst.msk [vmem:[#allocation2 + $0x20] sm:$0xf] %vm1606_vm14, %v1575_v14  ;;  %v2307_v14 = vld [vmem:[%s2550_s24 + $0x68] sm:$0x1]  ;;  %v1717_v21 = vrot.slane %v1715_v11, 4 }
  0xf4   : > { %1289 = vrot.lane.b32.xlu0 %v2253_v9, %s2488_s30  ;;  %v1565_v25 = vpop.permute.xlu1 %1564  ;;  %v1557_v8 = vsel %vm2574_vm5, %v1552_v62, %v1556_v2  ;;  %v1689_v9 = vrot.slane %v1687_v1, 4  ;;  %v1547_v16 = vsel %vm2574_vm5, %v1542_v6, %v3178_v39  ;;  %v1718_v22 = vrot.slane %v2307_v14, 5 }
  0xf5   : > { %1610 = vst.msk [vmem:[#allocation2 + $0xc] sm:$0xf] %vm1606_vm14, %v1565_v25  ;;  %v2298_v25 = vld [vmem:[%s2550_s24 + $0x44] sm:$0x1]  ;;  %v2314_v39 = vrot.slane %v2296_v33, 9 }
  0xf6   : > { %v1563_v34 = vpop.permute.xlu0 %1562  ;;  %1307 = vrot.lane.b32.xlu1 %v2262_v10, %s2488_s30  ;;  %v1690_v10 = vrot.slane %v2295_v59, 5  ;;  %v1719_v23 = vsel %vm2552_vm2, %v1717_v21, %v1718_v22 }
  0xf7   : > { %1609 = vst.msk [vmem:[#allocation2 + $0x8] sm:$0xf] %vm1606_vm14, %v1563_v34  ;;  %v1696_v34 = vrot.slane %v1694_v24, 4  ;;  %v1695_v48 = vsel %vm2552_vm2, %v2314_v39, %v1694_v24 }
  0xf8   : > { %1305 = vrot.lane.b32.xlu0 %v2261_v28, %s2488_s30  ;;  %v1581_v42 = vpop.permute.xlu1 %1580  ;;  %v1691_v20 = vsel %vm2552_vm2, %v1689_v9, %v1690_v10  ;;  %v2317_v28 = vrot.slane %v2305_v17, 9 }
  0xf9   : > { %1618 = vst.msk [vmem:[#allocation2 + $0x2c] sm:$0xf] %vm1606_vm14, %v1581_v42  ;;  %v2308_v42 = vld [vmem:[%s2550_s24 + $0x6c] sm:$0xe] }
  0xfa   : > { %v1579_v49 = vpop.permute.xlu0 %1578  ;;  %1568 = vrot.lane.b32.xlu1 %v1437_v31, %s2489_s4  ;;  %v1697_v31 = vrot.slane %v2298_v25, 5  ;;  %v1716_v38 = vsel %vm2552_vm2, %v2317_v28, %v1715_v11  ;;  %v2318_v46 = vrot.slane %v2308_v42, 9 }
  0xfb   : > { %1617 = vst.msk [vmem:[#allocation2 + $0x28] sm:$0xf] %vm1606_vm14, %v1579_v49 }
  0xfc   : > { %1566 = vrot.lane.b32.xlu0 %v1427_v43, %s2489_s4  ;;  %v1730_v54 = vpop.permute.xlu1 %1729  ;;  %v1698_v43 = vsel %vm2552_vm2, %v1696_v34, %v1697_v31  ;;  %v1723_v52 = vsel %vm2552_vm2, %v2318_v46, %v1722_v35 }
  0xfd   : > { %1777 = vst.msk [vmem:[#allocation2 + $0x4] sm:$0xf] %vm1775_vm15, %v1730_v54 }
  0xfe   : > { %v1728_v60 = vpop.permute.xlu0 %1727  ;;  %1584 = vrot.lane.b32.xlu1 %v1533_v51, %s2489_s4 }
  0xff   : > { %1776 = vst.msk [vmem:[#allocation2] sm:$0xf] %vm1775_vm15, %v1728_v60 }
 0x100   : > { %1582 = vrot.lane.b32.xlu0 %v1523_v56, %s2489_s4  ;;  %v1746_v4 = vpop.permute.xlu1 %1745 }
 0x101   : > { %1785 = vst.msk [vmem:[#allocation2 + $0x24] sm:$0xf] %vm1775_vm15, %v1746_v4 }
 0x102   : > { %v1744_v3 = vpop.permute.xlu0 %1743  ;;  %1572 = vrot.lane.b32.xlu1 %v1461_v63, %s2489_s4 }
 0x103   : > { %1784 = vst.msk [vmem:[#allocation2 + $0x20] sm:$0xf] %vm1775_vm15, %v1744_v3 }
 0x104   : > { %1570 = vrot.lane.b32.xlu0 %v1451_v5, %s2489_s4  ;;  %v464_v12 = vpop.permute.xlu1 %463 }
 0x105   : > { %507 = vst.msk [vmem:[#allocation2 + $0x14] sm:$0xf] %vm501_vm7, %v464_v12 }
 0x106   : > { %v462_v13 = vpop.permute.xlu0 %461  ;;  %1588 = vrot.lane.b32.xlu1 %v1557_v8, %s2489_s4  ;;  %v2432_v19 = vld [vmem:[#allocation2] sm:$0xff]  }
 0x107   : > { %506 = vst.msk [vmem:[#allocation2 + $0x10] sm:$0xf] %vm501_vm7, %v462_v13  ;;  %2359 = vmatprep.mubr.msk.bf16.mxu0 %vm1875_vm0, %v2432_v19 }
 0x108   : > { %1586 = vrot.lane.b32.xlu0 %v1547_v16, %s2489_s4  ;;  %v480_v32 = vpop.permute.xlu1 %479 }
 0x109   : > { %515 = vst.msk [vmem:[#allocation2 + $0x34] sm:$0xf] %vm501_vm7, %v480_v32 }
 0x10a   : > { %v478_v29 = vpop.permute.xlu0 %477  ;;  %1737 = vrot.lane.b32.xlu1 %v1691_v20, %s2490_s5  ;;  %v2434_v30 = vld [vmem:[#allocation2 + $0x20] sm:$0xff]  }
 0x10b   : > { %514 = vst.msk [vmem:[#allocation2 + $0x30] sm:$0xf] %vm501_vm7, %v478_v29  ;;  %2367 = vmatprep.mubr.msk.bf16.mxu1 %vm1875_vm0, %v2434_v30 }
 0x10c   : > { %1735 = vrot.lane.b32.xlu0 %v1688_v27, %s2490_s5  ;;  %v1734_v36 = vpop.permute.xlu1 %1733 }
 0x10d   : > { %1779 = vst.msk [vmem:[#allocation2 + $0xc] sm:$0xf] %vm1775_vm15, %v1734_v36 }
 0x10e   : > { %v1732_v41 = vpop.permute.xlu0 %1731  ;;  %1753 = vrot.lane.b32.xlu1 %v1719_v23, %s2490_s5 }
 0x10f   : > { %1778 = vst.msk [vmem:[#allocation2 + $0x8] sm:$0xf] %vm1775_vm15, %v1732_v41 }
 0x110   : > { %1751 = vrot.lane.b32.xlu0 %v1716_v38, %s2490_s5  ;;  %v1750_v40 = vpop.permute.xlu1 %1749 }
 0x111   : > { %1787 = vst.msk [vmem:[#allocation2 + $0x2c] sm:$0xf] %vm1775_vm15, %v1750_v40 }
 0x112   : > { %v1748_v49 = vpop.permute.xlu0 %1747  ;;  %1741 = vrot.lane.b32.xlu1 %v1698_v43, %s2490_s5 }
 0x113   : > { %1786 = vst.msk [vmem:[#allocation2 + $0x28] sm:$0xf] %vm1775_vm15, %v1748_v49 }
 0x114   : > { %1739 = vrot.lane.b32.xlu0 %v1695_v48, %s2490_s5  ;;  %v468_v51 = vpop.permute.xlu1 %467 }
 0x115   : > { %509 = vst.msk [vmem:[#allocation2 + $0x1c] sm:$0xf] %vm501_vm7, %v468_v51 }
 0x116   : > { %v466_v45 = vpop.permute.xlu0 %465  ;;  %1757 = vrot.lane.b32.xlu1 %v1726_v50, %s2490_s5  ;;  %v2437_v53 = vld [vmem:[#allocation2 + $0x8] sm:$0xff]  }
 0x117   : > { %508 = vst.msk [vmem:[#allocation2 + $0x18] sm:$0xf] %vm501_vm7, %v466_v45  ;;  %2360 = vmatmul.mubr.msk.bf16.vlgmr.msra.gmra.mxu0 %vm1875_vm0, %v2437_v53  ;;  %v3332_v53 = vld [vmem:[%s3404_s2] ss:$0 sm:$0xff] }
 0x118   : > { %1755 = vrot.lane.b32.xlu0 %v1723_v52, %s2490_s5  ;;  %v484_v54 = vpop.permute.xlu1 %483 }
 0x119   : > { %517 = vst.msk [vmem:[#allocation2 + $0x3c] sm:$0xf] %vm501_vm7, %v484_v54 }
 0x11a   : > { %v482_v55 = vpop.permute.xlu0 %481  ;;  %v2438_v56 = vld [vmem:[#allocation2 + $0x28] sm:$0xff]  }
 0x11b   : > { %516 = vst.msk [vmem:[#allocation2 + $0x38] sm:$0xf] %vm501_vm7, %v482_v55  ;;  %2368 = vmatmul.mubr.msk.bf16.vlgmr.msra.gmra.mxu1 %vm1875_vm0, %v2438_v56 }
 0x11c   : > { %v636_v0 = vpop.permute.xlu1 %635 }
 0x11d   : > { %679 = vst.msk [vmem:[#allocation2 + $0x14] sm:$0xf] %vm673_vm8, %v636_v0 }
 0x11e   : > { %v634_v57 = vpop.permute.xlu0 %633 }
 0x11f   : > { %678 = vst.msk [vmem:[#allocation2 + $0x10] sm:$0xf] %vm673_vm8, %v634_v57 }
 0x120   : > { %v652_v58 = vpop.permute.xlu1 %651 }
 0x121   : > { %687 = vst.msk [vmem:[#allocation2 + $0x34] sm:$0xf] %vm673_vm8, %v652_v58 }
 0x122   : > { %v650_v60 = vpop.permute.xlu0 %649 }
 0x123   : > { %686 = vst.msk [vmem:[#allocation2 + $0x30] sm:$0xf] %vm673_vm8, %v650_v60 }
 0x124   : > { %v640_v63 = vpop.permute.xlu1 %639 }
 0x125   : > { %681 = vst.msk [vmem:[#allocation2 + $0x1c] sm:$0xf] %vm673_vm8, %v640_v63 }
 0x126   : > { %v638_v62 = vpop.permute.xlu0 %637 }
 0x127   : > { %680 = vst.msk [vmem:[#allocation2 + $0x18] sm:$0xf] %vm673_vm8, %v638_v62 }
 0x128   : > { %v656_v2 = vpop.permute.xlu1 %655 }
 0x129   : > { %689 = vst.msk [vmem:[#allocation2 + $0x3c] sm:$0xf] %vm673_vm8, %v656_v2 }
 0x12a   : > { %v654_v1 = vpop.permute.xlu0 %653 }
 0x12b   : > { %688 = vst.msk [vmem:[#allocation2 + $0x38] sm:$0xf] %vm673_vm8, %v654_v1 }
 0x12c   : > { %v737_v4 = vpop.permute.xlu1 %736 }
 0x12d   : > { %780 = vst.msk [vmem:[#allocation2 + $0x14] sm:$0xf] %vm774_vm10, %v737_v4 }
 0x12e   : > { %v735_v59 = vpop.permute.xlu0 %734 }
 0x12f   : > { %779 = vst.msk [vmem:[#allocation2 + $0x10] sm:$0xf] %vm774_vm10, %v735_v59 }
 0x130   : > { %v753_v61 = vpop.permute.xlu1 %752 }
 0x131   : > { %788 = vst.msk [vmem:[#allocation2 + $0x34] sm:$0xf] %vm774_vm10, %v753_v61 }
 0x132   : > { %v751_v5 = vpop.permute.xlu0 %750 }
 0x133   : > { %787 = vst.msk [vmem:[#allocation2 + $0x30] sm:$0xf] %vm774_vm10, %v751_v5 }
 0x134   : > { %v741_v6 = vpop.permute.xlu1 %740 }
 0x135   : > { %782 = vst.msk [vmem:[#allocation2 + $0x1c] sm:$0xf] %vm774_vm10, %v741_v6 }
 0x136   : > { %v739_v3 = vpop.permute.xlu0 %738 }
 0x137   : > { %781 = vst.msk [vmem:[#allocation2 + $0x18] sm:$0xf] %vm774_vm10, %v739_v3 }
 0x138   : > { %v757_v7 = vpop.permute.xlu1 %756 }
 0x139   : > { %790 = vst.msk [vmem:[#allocation2 + $0x3c] sm:$0xf] %vm774_vm10, %v757_v7 }
 0x13a   : > { %v755_v8 = vpop.permute.xlu0 %754 }
 0x13b   : > { %789 = vst.msk [vmem:[#allocation2 + $0x38] sm:$0xf] %vm774_vm10, %v755_v8 }
 0x13c   : > { %v1018_v9 = vpop.permute.xlu1 %1017 }
 0x13d   : > { %1061 = vst.msk [vmem:[#allocation2 + $0x14] sm:$0xf] %vm1055_vm11, %v1018_v9 }
 0x13e   : > { %v1016_v10 = vpop.permute.xlu0 %1015 }
 0x13f   : > { %1060 = vst.msk [vmem:[#allocation2 + $0x10] sm:$0xf] %vm1055_vm11, %v1016_v10 }
 0x140   : > { %v1034_v11 = vpop.permute.xlu1 %1033 }
 0x141   : > { %1069 = vst.msk [vmem:[#allocation2 + $0x34] sm:$0xf] %vm1055_vm11, %v1034_v11 }
 0x142   : > { %v1032_v12 = vpop.permute.xlu0 %1031 }
 0x143   : > { %1068 = vst.msk [vmem:[#allocation2 + $0x30] sm:$0xf] %vm1055_vm11, %v1032_v12 }
 0x144   : > { %v1022_v14 = vpop.permute.xlu1 %1021 }
 0x145   : > { %1063 = vst.msk [vmem:[#allocation2 + $0x1c] sm:$0xf] %vm1055_vm11, %v1022_v14 }
 0x146   : > { %v1020_v15 = vpop.permute.xlu0 %1019 }
 0x147   : > { %1062 = vst.msk [vmem:[#allocation2 + $0x18] sm:$0xf] %vm1055_vm11, %v1020_v15 }
 0x148   : > { %v1038_v16 = vpop.permute.xlu1 %1037 }
 0x149   : > { %1071 = vst.msk [vmem:[#allocation2 + $0x3c] sm:$0xf] %vm1055_vm11, %v1038_v16 }
 0x14a   : > { %v1036_v18 = vpop.permute.xlu0 %1035 }
 0x14b   : > { %1070 = vst.msk [vmem:[#allocation2 + $0x38] sm:$0xf] %vm1055_vm11, %v1036_v18 }
 0x14c   : > { %v1187_v13 = vpop.permute.xlu1 %1186 }
 0x14d   : > { %1230 = vst.msk [vmem:[#allocation2 + $0x14] sm:$0xf] %vm1224_vm12, %v1187_v13 }
 0x14e   : > { %v1185_v19 = vpop.permute.xlu0 %1184 }
 0x14f   : > { %1229 = vst.msk [vmem:[#allocation2 + $0x10] sm:$0xf] %vm1224_vm12, %v1185_v19 }
 0x150   : > { %v1203_v17 = vpop.permute.xlu1 %1202 }
 0x151   : > { %1238 = vst.msk [vmem:[#allocation2 + $0x34] sm:$0xf] %vm1224_vm12, %v1203_v17 }
 0x152   : > { %v1201_v20 = vpop.permute.xlu0 %1200 }
 0x153   : > { %1237 = vst.msk [vmem:[#allocation2 + $0x30] sm:$0xf] %vm1224_vm12, %v1201_v20 }
 0x154   : > { %v1191_v21 = vpop.permute.xlu1 %1190 }
 0x155   : > { %1232 = vst.msk [vmem:[#allocation2 + $0x1c] sm:$0xf] %vm1224_vm12, %v1191_v21 }
 0x156   : > { %v1189_v22 = vpop.permute.xlu0 %1188 }
 0x157   : > { %1231 = vst.msk [vmem:[#allocation2 + $0x18] sm:$0xf] %vm1224_vm12, %v1189_v22 }
 0x158   : > { %v1207_v24 = vpop.permute.xlu1 %1206 }
 0x159   : > { %1240 = vst.msk [vmem:[#allocation2 + $0x3c] sm:$0xf] %vm1224_vm12, %v1207_v24 }
 0x15a   : > { %v1205_v32 = vpop.permute.xlu0 %1204 }
 0x15b   : > { %1239 = vst.msk [vmem:[#allocation2 + $0x38] sm:$0xf] %vm1224_vm12, %v1205_v32 }
 0x15c   : > { %v1288_v25 = vpop.permute.xlu1 %1287 }
 0x15d   : > { %1331 = vst.msk [vmem:[#allocation2 + $0x14] sm:$0xf] %vm1325_vm13, %v1288_v25 }
 0x15e   : > { %v1286_v26 = vpop.permute.xlu0 %1285 }
 0x15f   : > { %1330 = vst.msk [vmem:[#allocation2 + $0x10] sm:$0xf] %vm1325_vm13, %v1286_v26 }
 0x160   : > { %v1304_v27 = vpop.permute.xlu1 %1303 }
 0x161   : > { %1339 = vst.msk [vmem:[#allocation2 + $0x34] sm:$0xf] %vm1325_vm13, %v1304_v27 }
 0x162   : > { %v1302_v28 = vpop.permute.xlu0 %1301 }
 0x163   : > { %1338 = vst.msk [vmem:[#allocation2 + $0x30] sm:$0xf] %vm1325_vm13, %v1302_v28 }
 0x164   : > { %v1292_v29 = vpop.permute.xlu1 %1291 }
 0x165   : > { %1333 = vst.msk [vmem:[#allocation2 + $0x1c] sm:$0xf] %vm1325_vm13, %v1292_v29 }
 0x166   : > { %v1290_v30 = vpop.permute.xlu0 %1289 }
 0x167   : > { %1332 = vst.msk [vmem:[#allocation2 + $0x18] sm:$0xf] %vm1325_vm13, %v1290_v30 }
 0x168   : > { %v1308_v33 = vpop.permute.xlu1 %1307 }
 0x169   : > { %1341 = vst.msk [vmem:[#allocation2 + $0x3c] sm:$0xf] %vm1325_vm13, %v1308_v33 }
 0x16a   : > { %v1306_v23 = vpop.permute.xlu0 %1305 }
 0x16b   : > { %1340 = vst.msk [vmem:[#allocation2 + $0x38] sm:$0xf] %vm1325_vm13, %v1306_v23 }
 0x16c   : > { %v1569_v34 = vpop.permute.xlu1 %1568 }
 0x16d   : > { %1612 = vst.msk [vmem:[#allocation2 + $0x14] sm:$0xf] %vm1606_vm14, %v1569_v34 }
 0x16e   : > { %v1567_v31 = vpop.permute.xlu0 %1566 }
 0x16f   : > { %1611 = vst.msk [vmem:[#allocation2 + $0x10] sm:$0xf] %vm1606_vm14, %v1567_v31 }
 0x170   : > { %v1585_v35 = vpop.permute.xlu1 %1584 }
 0x171   : > { %1620 = vst.msk [vmem:[#allocation2 + $0x34] sm:$0xf] %vm1606_vm14, %v1585_v35 }
 0x172   : > { %v1583_v36 = vpop.permute.xlu0 %1582 }
 0x173   : > { %1619 = vst.msk [vmem:[#allocation2 + $0x30] sm:$0xf] %vm1606_vm14, %v1583_v36 }
 0x174   : > { %v1573_v37 = vpop.permute.xlu1 %1572 }
 0x175   : > { %1614 = vst.msk [vmem:[#allocation2 + $0x1c] sm:$0xf] %vm1606_vm14, %v1573_v37 }
 0x176   : > { %v1571_v38 = vpop.permute.xlu0 %1570 }
 0x177   : > { %1613 = vst.msk [vmem:[#allocation2 + $0x18] sm:$0xf] %vm1606_vm14, %v1571_v38 }
 0x178   : > { %v1589_v39 = vpop.permute.xlu1 %1588 }
 0x179   : > { %1622 = vst.msk [vmem:[#allocation2 + $0x3c] sm:$0xf] %vm1606_vm14, %v1589_v39 }
 0x17a   : > { %v1587_v41 = vpop.permute.xlu0 %1586 }
 0x17b   : > { %1621 = vst.msk [vmem:[#allocation2 + $0x38] sm:$0xf] %vm1606_vm14, %v1587_v41 }
 0x17c   : > { %v1738_v42 = vpop.permute.xlu1 %1737 }
 0x17d   : > { %1781 = vst.msk [vmem:[#allocation2 + $0x14] sm:$0xf] %vm1775_vm15, %v1738_v42 }
 0x17e   : > { %v1736_v43 = vpop.permute.xlu0 %1735 }
 0x17f   : > { %1780 = vst.msk [vmem:[#allocation2 + $0x10] sm:$0xf] %vm1775_vm15, %v1736_v43 }
 0x180   : > { %v1754_v44 = vpop.permute.xlu1 %1753 }
 0x181   : > { %1789 = vst.msk [vmem:[#allocation2 + $0x34] sm:$0xf] %vm1775_vm15, %v1754_v44 }
 0x182   : > { %v1752_v47 = vpop.permute.xlu0 %1751 }
 0x183   : > { %1788 = vst.msk [vmem:[#allocation2 + $0x30] sm:$0xf] %vm1775_vm15, %v1752_v47 }
 0x184   : > { %v1742_v40 = vpop.permute.xlu1 %1741 }
 0x185   : > { %1783 = vst.msk [vmem:[#allocation2 + $0x1c] sm:$0xf] %vm1775_vm15, %v1742_v40 }
 0x186   : > { %v1740_v48 = vpop.permute.xlu0 %1739  ;;  %v2439_v46 = vld [vmem:[#allocation2 + $0x10] sm:$0xff]  }
 0x187   : > { %1782 = vst.msk [vmem:[#allocation2 + $0x18] sm:$0xf] %vm1775_vm15, %v1740_v48  ;;  %2363 = vmatprep.mubr.msk.bf16.mxu0 %vm1875_vm0, %v2439_v46 }
 0x188   : > { %v1758_v49 = vpop.permute.xlu1 %1757 }
 0x189   : > { %1791 = vst.msk [vmem:[#allocation2 + $0x3c] sm:$0xf] %vm1775_vm15, %v1758_v49 }
 0x18a   : > { %v1756_v50 = vpop.permute.xlu0 %1755  ;;  %v2440_v51 = vld [vmem:[#allocation2 + $0x30] sm:$0xff]  }
 0x18b   : > { %1790 = vst.msk [vmem:[#allocation2 + $0x38] sm:$0xf] %vm1775_vm15, %v1756_v50  ;;  %2371 = vmatprep.mubr.msk.bf16.mxu1 %vm1875_vm0, %v2440_v51 }
 0x18e   : > { %v2441_v52 = vld [vmem:[#allocation2 + $0x18] sm:$0xff]  }
 0x18f   : > { %2364 = vmatmul.mubr.msk.bf16.gmra.mxu0 %vm1875_vm0, %v2441_v52 }
 0x192   : > { %v2442_v45 = vld [vmem:[#allocation2 + $0x38] sm:$0xff]  }
 0x193   : > { %2372 = vmatmul.mubr.msk.bf16.gmra.mxu1 %vm1875_vm0, %v2442_v45 }
 0x1d7   : > { %v2361_v54 = vpop.f32.mrf.mxu0 }
 0x1d8   : > { %v1947_v55 = vadd.f32 %v2361_v54, %v3332_v53 }
 0x1d9   : > { %v1938_v56 = vpop.f32.mrf.mxu0 }
 0x1da   : > { %v2003_v0 = vmul.f32 0.2, %v1947_v55  ;;  %v1939_v57 = vadd.f32 %v3332_v53, %v1938_v56 }
 0x1db   : > { %v2362_v58 = vpop.f32.mrf.mxu0  ;;  %v2369_v60 = vpop.f32.mrf.mxu1 }
 0x1dc   : > { %v2019_v63 = vmax.f32 %v1947_v55, %v2003_v0  ;;  %v2001_v62 = vmul.f32 0.2, %v1939_v57  ;;  %v1950_v2 = vadd.f32 %v2362_v58, %v3332_v53  ;;  %v1979_v1 = vadd.f32 %v2369_v60, %v3332_v53 }
 0x1dd   : > { %v1941_v4 = vpop.f32.mrf.mxu0  ;;  %v1970_v59 = vpop.f32.mrf.mxu1 }
 0x1de   : > { %2036 = vst.msk [vmem:[%s3339_s27 + $0x10] sm:$0xff] %vm2033_vm1, %v2019_v63  ;;  %v2017_v61 = vmax.f32 %v1939_v57, %v2001_v62  ;;  %v2004_v5 = vmul.f32 0.2, %v1950_v2  ;;  %v2011_v6 = vmul.f32 0.2, %v1979_v1  ;;  %v1942_v3 = vadd.f32 %v3332_v53, %v1941_v4 }
 0x1df   : > { %v1971_v7 = vadd.f32 %v3332_v53, %v1970_v59  ;;  %v2370_v8 = vpop.f32.mrf.mxu1 }
 0x1e0   : > { %2034 = vst.msk [vmem:[%s3339_s27] sm:$0xff] %vm2033_vm1, %v2017_v61  ;;  %v2020_v9 = vmax.f32 %v1950_v2, %v2004_v5  ;;  %v2027_v10 = vmax.f32 %v1979_v1, %v2011_v6  ;;  %v2002_v11 = vmul.f32 0.2, %v1942_v3  ;;  %v1982_v12 = vadd.f32 %v2370_v8, %v3332_v53 }
 0x1e1   : > { %v2009_v14 = vmul.f32 0.2, %v1971_v7  ;;  %v1973_v15 = vpop.f32.mrf.mxu1 }
 0x1e2   : > { %2037 = vst.msk [vmem:[%s3339_s27 + $0x18] sm:$0xff] %vm2033_vm1, %v2020_v9  ;;  %2044 = vst.msk [vmem:[%s3339_s27 + $0x50] sm:$0xff] %vm2033_vm1, %v2027_v10  ;;  %v2018_v16 = vmax.f32 %v1942_v3, %v2002_v11  ;;  %v2012_v18 = vmul.f32 0.2, %v1982_v12  ;;  %v1974_v13 = vadd.f32 %v3332_v53, %v1973_v15 }
 0x1e3   : > { %v2025_v19 = vmax.f32 %v1971_v7, %v2009_v14 }
 0x1e4   : > { %2035 = vst.msk [vmem:[%s3339_s27 + $0x8] sm:$0xff] %vm2033_vm1, %v2018_v16  ;;  %v2028_v17 = vmax.f32 %v1982_v12, %v2012_v18  ;;  %v2010_v20 = vmul.f32 0.2, %v1974_v13 }
 0x1e5   : > { %2042 = vst.msk [vmem:[%s3339_s27 + $0x40] sm:$0xff] %vm2033_vm1, %v2025_v19 }
 0x1e6   : > { %2045 = vst.msk [vmem:[%s3339_s27 + $0x58] sm:$0xff] %vm2033_vm1, %v2028_v17  ;;  %v2026_v21 = vmax.f32 %v1974_v13, %v2010_v20 }
 0x1e8   : > { %2043 = vst.msk [vmem:[%s3339_s27 + $0x48] sm:$0xff] %vm2033_vm1, %v2026_v21 }
 0x24f   : > { %v2365_v22 = vpop.f32.mrf.mxu0 }
 0x250   : > { %v1963_v24 = vadd.f32 %v2365_v22, %v3332_v53 }
 0x251   : > { %v1954_v32 = vpop.f32.mrf.mxu0 }
 0x252   : > { %v2007_v25 = vmul.f32 0.2, %v1963_v24  ;;  %v1955_v26 = vadd.f32 %v3332_v53, %v1954_v32 }
 0x253   : > { %v2366_v27 = vpop.f32.mrf.mxu0  ;;  %v2373_v28 = vpop.f32.mrf.mxu1 }
 0x254   : > { %v2023_v29 = vmax.f32 %v1963_v24, %v2007_v25  ;;  %v2005_v30 = vmul.f32 0.2, %v1955_v26  ;;  %v1966_v33 = vadd.f32 %v2366_v27, %v3332_v53  ;;  %v1995_v23 = vadd.f32 %v2373_v28, %v3332_v53 }
 0x255   : > { %v1957_v34 = vpop.f32.mrf.mxu0  ;;  %v1986_v31 = vpop.f32.mrf.mxu1 }
 0x256   : > { %2040 = vst.msk [vmem:[%s3339_s27 + $0x30] sm:$0xff] %vm2033_vm1, %v2023_v29  ;;  %v2021_v35 = vmax.f32 %v1955_v26, %v2005_v30  ;;  %v2008_v36 = vmul.f32 0.2, %v1966_v33  ;;  %v2015_v37 = vmul.f32 0.2, %v1995_v23  ;;  %v1958_v38 = vadd.f32 %v3332_v53, %v1957_v34 }
 0x257   : > { %v1987_v39 = vadd.f32 %v3332_v53, %v1986_v31  ;;  %v2374_v41 = vpop.f32.mrf.mxu1 }
 0x258   : > { %2038 = vst.msk [vmem:[%s3339_s27 + $0x20] sm:$0xff] %vm2033_vm1, %v2021_v35  ;;  %v2024_v42 = vmax.f32 %v1966_v33, %v2008_v36  ;;  %v2031_v43 = vmax.f32 %v1995_v23, %v2015_v37  ;;  %v2006_v44 = vmul.f32 0.2, %v1958_v38  ;;  %v1998_v47 = vadd.f32 %v2374_v41, %v3332_v53 }
 0x259   : > { %v2013_v40 = vmul.f32 0.2, %v1987_v39  ;;  %v1989_v48 = vpop.f32.mrf.mxu1 }
 0x25a   : > { %2041 = vst.msk [vmem:[%s3339_s27 + $0x38] sm:$0xff] %vm2033_vm1, %v2024_v42  ;;  %2048 = vst.msk [vmem:[%s3339_s27 + $0x70] sm:$0xff] %vm2033_vm1, %v2031_v43  ;;  %v2022_v46 = vmax.f32 %v1958_v38, %v2006_v44  ;;  %v2016_v49 = vmul.f32 0.2, %v1998_v47  ;;  %v1990_v50 = vadd.f32 %v3332_v53, %v1989_v48 }
 0x25b   : > { %v2029_v51 = vmax.f32 %v1987_v39, %v2013_v40 }
 0x25c   : > { %2039 = vst.msk [vmem:[%s3339_s27 + $0x28] sm:$0xff] %vm2033_vm1, %v2022_v46  ;;  %v2032_v52 = vmax.f32 %v1998_v47, %v2016_v49  ;;  %v2014_v45 = vmul.f32 0.2, %v1990_v50 }
 0x25d   : > { %2046 = vst.msk [vmem:[%s3339_s27 + $0x60] sm:$0xff] %vm2033_vm1, %v2029_v51 }
 0x25e   : > { %2049 = vst.msk [vmem:[%s3339_s27 + $0x78] sm:$0xff] %vm2033_vm1, %v2032_v52  ;;  %v2030_v54 = vmax.f32 %v1990_v50, %v2014_v45 }
 0x260   : > { %2047 = vst.msk [vmem:[%s3339_s27 + $0x68] sm:$0xff] %vm2033_vm1, %v2030_v54 }
 0x261 PF: > { %s13_s16 = sadd.s32 1, %s2481_s16   ;;  %s3410_s12 = smov %s2473_s14 }
 0x262   : > { %p10_p7 = scmp.ge.s32.totalorder %s13_s16, 6   ;;  %s3411_s13 = smov %s2477_s15 }
 0x263   : > { %s3412_s14 = smov %s3415_s17  ;;  %s3413_s15 = smov %s3419_s18 }
 0x264   :  { %12 = sbr.rel (!%p10_p7) target bundleno = 3 (0x3), region = 65 }

</bundles_post_ra>
